<compile_context>
chip_gen: v5e
topology: v5e:2x2
jax: 0.10.0
libtpu: 0.0.40
codegen_flags: <defaults>
</compile_context>

<pallas_src>
import functools
import math

import jax
import jax.numpy as jnp
from jax.experimental import pallas as pl
from jax.experimental.pallas import tpu as pltpu

LN_EPS = 1e-5  # PyTorch nn.LayerNorm default


# ----------------------------------------------------------------------------
# VMEM budgeting (generation-aware: v5e/v6e = 128 MiB, v7x = 64 MiB per core)
# ----------------------------------------------------------------------------
def _physical_vmem_bytes():
    try:
        return int(pltpu.get_tpu_info().vmem_capacity_bytes)
    except Exception:
        return 64 * 1024 * 1024  # conservative fallback (v7x per-core VMEM)


def _estimate_vmem_bytes(bt, S, H, P, nh, kv_blk):
    """Rough per-grid-step VMEM footprint for one (batch-tile, layer) step."""
    f32, bf16 = 4, 2
    act = bt * S * H
    # double-buffered per-layer weights + biases / LN params
    w = 2 * ((3 * H * H + H * H + 2 * H * P) * bf16 + (3 * H + 6 * H + P) * f32)
    # pipelined (aliased) input block (x2) + carried output block (+ writeback)
    io = 4 * act * f32
    # ctx merge scratch
    scr = act * bf16
    # live temporaries: qkv f32, one head's q/k/v bf16, scores+probs f32,
    # FFN hidden (f32 + bf16), residual / LayerNorm temporaries
    skv = kv_blk if (S > kv_blk and S % kv_blk == 0) else S
    dh = H // nh
    tmp = (3 * act * f32 + 3 * bt * S * dh * bf16 + 2 * bt * S * skv * f32
           + bt * S * P * (f32 + bf16) + 2 * act * f32)
    return w + io + scr + tmp


def _choose_batch_tile(B, S, H, P, nh, kv_blk, budget_bytes):
    """Largest batch tile fitting the VMEM budget.  Prefer >=2 tiles so the
    'parallel' grid axis can shard across v7x's two TensorCores."""
    divisors = [d for d in range(1, B + 1) if B % d == 0]
    fitting = [d for d in divisors
               if _estimate_vmem_bytes(d, S, H, P, nh, kv_blk) <= budget_bytes]
    if not fitting:
        return 1
    preferred = [d for d in fitting if B // d >= 2]
    return max(preferred) if preferred else max(fitting)


# ----------------------------------------------------------------------------
# Fused encoder kernel: one grid step = one (batch-tile, layer) pair
# ----------------------------------------------------------------------------
def _encoder_kernel(n_heads, kv_blk,
                    x_ref,
                    wqkv_ref, bqkv_ref, wo_ref, bo_ref,
                    g1_ref, be1_ref,
                    w1_ref, b1_ref, w2_ref, b2_ref,
                    g2_ref, be2_ref,
                    out_ref,
                    ctx_ref):
    layer = pl.program_id(1)

    # Initialize the carried activation from the embedded input on layer 0.
    @pl.when(layer == 0)
    def _():
        out_ref[...] = x_ref[...]

    bt, S, H = out_ref.shape
    nh = n_heads
    dh = H // nh
    scale = 1.0 / math.sqrt(dh)

    x = out_ref[...]                      # (bt, S, H) f32, carried activation
    xb = x.astype(jnp.bfloat16)           # bf16 operands feed the MXU

    # ---- fused QKV projection: single matmul against (H, 3H) --------------
    qkv = jnp.einsum('bsh,hk->bsk', xb, wqkv_ref[0],
                     preferred_element_type=jnp.float32) + bqkv_ref[0]

    # Flash-style KV tiling kicks in only for long sequences (static decision).
    use_flash = (S > kv_blk) and (S % kv_blk == 0)

    # ---- attention, one head at a time -------------------------------------
    # Per-head q/k/v are VALUE lane-slices (no scratch round-trip); the only
    # remaining head data movement is the nh lane-slice stores into the bf16
    # ctx scratch, which keeps the W_o matmul at full contraction depth H.
    # TODO(synk): src_mask=None path only (no masked_fill); add a mask input if needed.
    for h in range(nh):
        cols = slice(h * dh, (h + 1) * dh)
        qh = (qkv[:, :, cols] * scale).astype(jnp.bfloat16)              # (bt,S,dh)
        kh = qkv[:, :, H + h * dh:H + (h + 1) * dh].astype(jnp.bfloat16)
        vh = qkv[:, :, 2 * H + h * dh:2 * H + (h + 1) * dh].astype(jnp.bfloat16)

        if not use_flash:
            s = jnp.einsum('bqd,bkd->bqk', qh, kh,
                           preferred_element_type=jnp.float32)           # (bt,S,S)
            m = jnp.max(s, axis=-1, keepdims=True)
            p = jnp.exp(s - m)
            denom = jnp.sum(p, axis=-1, keepdims=True)
            ctx_h = jnp.einsum('bqk,bkd->bqd', p.astype(jnp.bfloat16), vh,
                               preferred_element_type=jnp.float32)
            ctx_h = ctx_h * pl.reciprocal(denom, approx=False)           # exact softmax
        else:
            # Online-softmax over KV tiles: never materialize (S, S) scores.
            m_i = jnp.full((bt, S, 1), -jnp.inf, dtype=jnp.float32)
            l_i = jnp.zeros((bt, S, 1), dtype=jnp.float32)
            acc = jnp.zeros((bt, S, dh), dtype=jnp.float32)
            for j in range(S // kv_blk):
                ks = kh[:, j * kv_blk:(j + 1) * kv_blk, :]
                vs = vh[:, j * kv_blk:(j + 1) * kv_blk, :]
                s = jnp.einsum('bqd,bkd->bqk', qh, ks,
                               preferred_element_type=jnp.float32)
                m_new = jnp.maximum(m_i, jnp.max(s, axis=-1, keepdims=True))
                alpha = jnp.exp(m_i - m_new)
                p = jnp.exp(s - m_new)
                l_i = alpha * l_i + jnp.sum(p, axis=-1, keepdims=True)
                acc = alpha * acc + jnp.einsum('bqk,bkd->bqd',
                                               p.astype(jnp.bfloat16), vs,
                                               preferred_element_type=jnp.float32)
                m_i = m_new
            ctx_h = acc * pl.reciprocal(l_i, approx=False)

        ctx_ref[:, :, cols] = ctx_h.astype(jnp.bfloat16)

    # ---- output projection (full-depth K = H) -------------------------------
    attn = jnp.einsum('bsh,hd->bsd', ctx_ref[...], wo_ref[0],
                      preferred_element_type=jnp.float32) + bo_ref[0]

    # ---- residual + LayerNorm 1 (dropout = identity in eval mode) ----------
    y = x + attn
    mu = jnp.mean(y, axis=-1, keepdims=True)
    var = jnp.mean((y - mu) ** 2, axis=-1, keepdims=True)
    y = (y - mu) * jax.lax.rsqrt(var + LN_EPS) * g1_ref[0] + be1_ref[0]

    # ---- position-wise feed-forward (bf16 matmuls, f32 accumulation) -------
    hdn = jnp.einsum('bsh,hp->bsp', y.astype(jnp.bfloat16), w1_ref[0],
                     preferred_element_type=jnp.float32) + b1_ref[0]
    hdn = jnp.maximum(hdn, 0.0)           # ReLU in f32
    ff = jnp.einsum('bsp,ph->bsh', hdn.astype(jnp.bfloat16), w2_ref[0],
                    preferred_element_type=jnp.float32) + b2_ref[0]

    # ---- residual + LayerNorm 2 ---------------------------------------------
    z = y + ff
    mu2 = jnp.mean(z, axis=-1, keepdims=True)
    var2 = jnp.mean((z - mu2) ** 2, axis=-1, keepdims=True)
    z = (z - mu2) * jax.lax.rsqrt(var2 + LN_EPS) * g2_ref[0] + be2_ref[0]

    out_ref[...] = z.astype(out_ref.dtype)


def encoder_pallas(x, params, n_heads, *, batch_tile=None, kv_block=512,
                   vmem_limit_bytes=None):
    """Run the whole encoder stack (all layers) as a single pallas_call."""
    B, S, H = x.shape
    (wqkv, bqkv, wo, bo, g1, be1, w1, b1, w2, b2, g2, be2) = params
    L = wqkv.shape[0]
    P = w1.shape[-1]
    nh = n_heads
    assert H % nh == 0

    phys = _physical_vmem_bytes()
    if vmem_limit_bytes is None:
        vmem_limit_bytes = int(phys * 0.75)           # ~96 MiB v5e/v6e, ~48 MiB v7x
    if batch_tile is None:
        batch_tile = _choose_batch_tile(B, S, H, P, nh, kv_block,
                                        int(vmem_limit_bytes * 0.85))
    bt = batch_tile
    assert B % bt == 0

    def per_layer(shape):
        # weight / bias blocks: indexed by layer, resident while layer is active
        return pl.BlockSpec((1,) + shape, lambda i, l: (l, 0, 0))

    act_spec = pl.BlockSpec((bt, S, H), lambda i, l: (i, 0, 0))

    grid_spec = pltpu.PrefetchScalarGridSpec(
        num_scalar_prefetch=0,
        grid=(B // bt, L),
        in_specs=[
            act_spec,                  # embedded input (aliased with the output)
            per_layer((H, 3 * H)),     # W_qkv (bf16)
            per_layer((1, 3 * H)),     # b_qkv
            per_layer((H, H)),         # W_o   (bf16)
            per_layer((1, H)),         # b_o
            per_layer((1, H)),         # ln1 gamma
            per_layer((1, H)),         # ln1 beta
            per_layer((H, P)),         # W_ff1 (bf16)
            per_layer((1, P)),         # b_ff1
            per_layer((P, H)),         # W_ff2 (bf16)
            per_layer((1, H)),         # b_ff2
            per_layer((1, H)),         # ln2 gamma
            per_layer((1, H)),         # ln2 beta
        ],
        out_specs=act_spec,            # same block across layer axis -> VMEM-resident carry
        scratch_shapes=[
            pltpu.VMEM((bt, S, H), jnp.bfloat16),     # merged attention context
        ],
    )

    # Advisory cost estimate (flops: qkv + w_o + ffn + attention matmuls).
    flops = 2 * B * S * L * (4 * H * H + 2 * H * P + 2 * S * H)
    transcendentals = L * B * nh * S * S
    w_bytes = L * ((3 * H * H + H * H + 2 * H * P) * 2 + (3 * H + 6 * H + P) * 4)
    bytes_accessed = w_bytes * (B // bt) + 3 * B * S * H * 4

    return pl.pallas_call(
        functools.partial(_encoder_kernel, nh, kv_block),
        out_shape=jax.ShapeDtypeStruct((B, S, H), jnp.float32),
        grid_spec=grid_spec,
        input_output_aliases={0: 0},   # embedded activations share HBM with output
        compiler_params=pltpu.CompilerParams(
            dimension_semantics=("parallel", "arbitrary"),
            vmem_limit_bytes=int(vmem_limit_bytes),
        ),
        cost_estimate=pl.CostEstimate(flops=int(flops),
                                      transcendentals=int(transcendentals),
                                      bytes_accessed=int(bytes_accessed)),
    )(x, *params)


# ----------------------------------------------------------------------------
# Parameter init (deterministic, synthetic), stacked along a leading layer axis
# ----------------------------------------------------------------------------
def init_encoder_params(key, input_dim, hid_dim, n_layers, pf_dim):
    H, P, L = hid_dim, pf_dim, n_layers
    k_tok, k_l = jax.random.split(key)
    tok_emb = jax.random.normal(k_tok, (input_dim, H), jnp.float32) * 0.02

    ks = jax.random.split(k_l, 12)
    s = 0.02
    wqkv = (jax.random.normal(ks[0], (L, H, 3 * H)) * s).astype(jnp.bfloat16)
    bqkv = jax.random.normal(ks[1], (L, 1, 3 * H), jnp.float32) * s
    wo = (jax.random.normal(ks[2], (L, H, H)) * s).astype(jnp.bfloat16)
    bo = jax.random.normal(ks[3], (L, 1, H), jnp.float32) * s
    g1 = 1.0 + jax.random.normal(ks[4], (L, 1, H), jnp.float32) * s
    be1 = jax.random.normal(ks[5], (L, 1, H), jnp.float32) * s
    w1 = (jax.random.normal(ks[6], (L, H, P)) * s).astype(jnp.bfloat16)
    b1 = jax.random.normal(ks[7], (L, 1, P), jnp.float32) * s
    w2 = (jax.random.normal(ks[8], (L, P, H)) * s).astype(jnp.bfloat16)
    b2 = jax.random.normal(ks[9], (L, 1, H), jnp.float32) * s
    g2 = 1.0 + jax.random.normal(ks[10], (L, 1, H), jnp.float32) * s
    be2 = jax.random.normal(ks[11], (L, 1, H), jnp.float32) * s
    return tok_emb, (wqkv, bqkv, wo, bo, g1, be1, w1, b1, w2, b2, g2, be2)


# TODO(synk): the PyTorch PositionalEmbedding class is not shown in the spec;
# sinusoidal (non-learned) positions are used here.
def sinusoidal_pos_embedding(src_len, hid_dim):
    pos = jnp.arange(src_len, dtype=jnp.float32)[:, None]             # (S, 1)
    i = jnp.arange(hid_dim, dtype=jnp.float32)[None, :]               # (1, H)
    angle = pos / jnp.power(10000.0, (2.0 * jnp.floor(i / 2.0)) / hid_dim)
    pe = jnp.where((jnp.arange(hid_dim) % 2) == 0, jnp.sin(angle), jnp.cos(angle))
    return pe[None, :, :]                                             # (1, S, H)


@functools.partial(jax.jit, static_argnames=("n_heads",))
def encoder_forward(src, tok_emb, params, *, n_heads):
    """src: (B, S) int32 token ids."""
    B, S = src.shape
    H = tok_emb.shape[1]
    x = tok_emb[src] + sinusoidal_pos_embedding(S, H)                 # (B, S, H)
    x = x.astype(jnp.float32)                                         # dropout = identity (eval)
    return encoder_pallas(x, params, n_heads)


# ----------------------------------------------------------------------------
# Pure-JAX reference (same math, same bf16 matmul operands) for correctness
# ----------------------------------------------------------------------------
def _layer_ref(x, lp, n_heads):
    wqkv, bqkv, wo, bo, g1, be1, w1, b1, w2, b2, g2, be2 = lp
    B, S, H = x.shape
    nh = n_heads
    dh = H // nh
    scale = 1.0 / math.sqrt(dh)

    xb = x.astype(jnp.bfloat16)
    qkv = jnp.einsum('bsh,hk->bsk', xb, wqkv,
                     preferred_element_type=jnp.float32) + bqkv
    q = (qkv[..., 0:H] * scale).astype(jnp.bfloat16)
    k = qkv[..., H:2 * H].astype(jnp.bfloat16)
    v = qkv[..., 2 * H:3 * H].astype(jnp.bfloat16)

    q4 = q.reshape(B, S, nh, dh).transpose(0, 2, 1, 3)
    k4 = k.reshape(B, S, nh, dh).transpose(0, 2, 1, 3)
    v4 = v.reshape(B, S, nh, dh).transpose(0, 2, 1, 3)
    e = jnp.einsum('bhqd,bhkd->bhqk', q4, k4, preferred_element_type=jnp.float32)
    p = jax.nn.softmax(e, axis=-1)
    ctx = jnp.einsum('bhqk,bhkd->bhqd', p.astype(jnp.bfloat16), v4,
                     preferred_element_type=jnp.float32)
    ctx = ctx.transpose(0, 2, 1, 3).reshape(B, S, H).astype(jnp.bfloat16)

    attn = jnp.einsum('bsh,hd->bsd', ctx, wo,
                      preferred_element_type=jnp.float32) + bo
    y = x + attn
    mu = y.mean(-1, keepdims=True)
    var = ((y - mu) ** 2).mean(-1, keepdims=True)
    y = (y - mu) / jnp.sqrt(var + LN_EPS) * g1 + be1

    h = jnp.maximum(jnp.einsum('bsh,hp->bsp', y.astype(jnp.bfloat16), w1,
                               preferred_element_type=jnp.float32) + b1, 0.0)
    ff = jnp.einsum('bsp,ph->bsh', h.astype(jnp.bfloat16), w2,
                    preferred_element_type=jnp.float32) + b2
    z = y + ff
    mu2 = z.mean(-1, keepdims=True)
    var2 = ((z - mu2) ** 2).mean(-1, keepdims=True)
    return (z - mu2) / jnp.sqrt(var2 + LN_EPS) * g2 + be2


def encoder_ref(src, tok_emb, params, n_heads):
    B, S = src.shape
    H = tok_emb.shape[1]
    x = (tok_emb[src] + sinusoidal_pos_embedding(S, H)).astype(jnp.float32)
    L = params[0].shape[0]
    for l in range(L):
        lp = tuple(p[l] for p in params)
        x = _layer_ref(x, lp, n_heads)
    return x


# ----------------------------------------------------------------------------
if __name__ == "__main__":
    input_dim = 50      # vocab size
    hid_dim = 32
    n_layers = 2
    n_heads = 4
    pf_dim = 64
    B, S = 2, 8

    key = jax.random.PRNGKey(0)
    k_param, k_src = jax.random.split(key)
    tok_emb, params = init_encoder_params(k_param, input_dim, hid_dim, n_layers, pf_dim)
    src = jax.random.randint(k_src, (B, S), 0, input_dim, dtype=jnp.int32)

    out = encoder_forward(src, tok_emb, params, n_heads=n_heads)
    out = jax.block_until_ready(out)

    ref = encoder_ref(src, tok_emb, params, n_heads)
    assert out.shape == (B, S, hid_dim), out.shape
    max_err = float(jnp.max(jnp.abs(out - ref)))
    assert jnp.allclose(out, ref, atol=1e-2, rtol=1e-2), max_err

    print("KERNEL_OK")
</pallas_src>

<mosaic_0001>
module attributes {stable_mosaic.version = 11 : i64} {
  func.func @_encoder_kernel(%arg0: i32, %arg1: i32, %arg2: memref<1x8x32xf32, #tpu.memory_space<vmem>>, %arg3: memref<1x32x96xbf16, #tpu.memory_space<vmem>>, %arg4: memref<1x1x96xf32, #tpu.memory_space<vmem>>, %arg5: memref<1x32x32xbf16, #tpu.memory_space<vmem>>, %arg6: memref<1x1x32xf32, #tpu.memory_space<vmem>>, %arg7: memref<1x1x32xf32, #tpu.memory_space<vmem>>, %arg8: memref<1x1x32xf32, #tpu.memory_space<vmem>>, %arg9: memref<1x32x64xbf16, #tpu.memory_space<vmem>>, %arg10: memref<1x1x64xf32, #tpu.memory_space<vmem>>, %arg11: memref<1x64x32xbf16, #tpu.memory_space<vmem>>, %arg12: memref<1x1x32xf32, #tpu.memory_space<vmem>>, %arg13: memref<1x1x32xf32, #tpu.memory_space<vmem>>, %arg14: memref<1x1x32xf32, #tpu.memory_space<vmem>>, %arg15: memref<1x8x32xf32, #tpu.memory_space<vmem>>, %arg16: memref<1x8x32xbf16, #tpu.memory_space<vmem>>) attributes {dimension_semantics = [#tpu.dimension_semantics<parallel>, #tpu.dimension_semantics<arbitrary>], iteration_bounds = array<i64: 2, 2>, scalar_prefetch = 0 : i64, scratch_operands = 1 : i64, tpu.core_type = #tpu.core_type<tc>, window_params = [{transform_indices = @transform_0, window_bounds = array<i64: 1, 8, 32>}, {transform_indices = @transform_1, window_bounds = array<i64: 1, 32, 96>}, {transform_indices = @transform_2, window_bounds = array<i64: 1, 1, 96>}, {transform_indices = @transform_3, window_bounds = array<i64: 1, 32, 32>}, {transform_indices = @transform_4, window_bounds = array<i64: 1, 1, 32>}, {transform_indices = @transform_5, window_bounds = array<i64: 1, 1, 32>}, {transform_indices = @transform_6, window_bounds = array<i64: 1, 1, 32>}, {transform_indices = @transform_7, window_bounds = array<i64: 1, 32, 64>}, {transform_indices = @transform_8, window_bounds = array<i64: 1, 1, 64>}, {transform_indices = @transform_9, window_bounds = array<i64: 1, 64, 32>}, {transform_indices = @transform_10, window_bounds = array<i64: 1, 1, 32>}, {transform_indices = @transform_11, window_bounds = array<i64: 1, 1, 32>}, {transform_indices = @transform_12, window_bounds = array<i64: 1, 1, 32>}, {transform_indices = @transform_13, window_bounds = array<i64: 1, 8, 32>}]} {
    %c0_i32 = arith.constant 0 : i32
    %0 = arith.cmpi eq, %arg1, %c0_i32 : i32
    %1 = arith.extui %0 : i1 to i32
    %c0_i32_0 = arith.constant 0 : i32
    %2 = arith.cmpi ne, %1, %c0_i32_0 : i32
    scf.if %2 {
      %c0_88 = arith.constant 0 : index
      %c0_89 = arith.constant 0 : index
      %c0_90 = arith.constant 0 : index
      %193 = vector.load %arg2[%c0_88, %c0_89, %c0_90] : memref<1x8x32xf32, #tpu.memory_space<vmem>>, vector<1x8x32xf32>
      %c0_91 = arith.constant 0 : index
      %c0_92 = arith.constant 0 : index
      %c0_93 = arith.constant 0 : index
      %194 = vector.load %arg15[%c0_91, %c0_92, %c0_93] : memref<1x8x32xf32, #tpu.memory_space<vmem>>, vector<1x8x32xf32>
      tpu.vector_store %arg15[%c0_91, %c0_92, %c0_93], %193 {strides = array<i32>} : memref<1x8x32xf32, #tpu.memory_space<vmem>>, vector<1x8x32xf32>,
    } else {
    }
    %c0 = arith.constant 0 : index
    %c0_1 = arith.constant 0 : index
    %c0_2 = arith.constant 0 : index
    %3 = vector.load %arg15[%c0, %c0_1, %c0_2] : memref<1x8x32xf32, #tpu.memory_space<vmem>>, vector<1x8x32xf32>
    %4 = arith.truncf %3 : vector<1x8x32xf32> to vector<1x8x32xbf16>
    %c0_3 = arith.constant 0 : index
    %c0_4 = arith.constant 0 : index
    %c0_5 = arith.constant 0 : index
    %5 = vector.load %arg3[%c0_3, %c0_4, %c0_5] : memref<1x32x96xbf16, #tpu.memory_space<vmem>>, vector<1x32x96xbf16>
    %6 = vector.shape_cast %5 : vector<1x32x96xbf16> to vector<32x96xbf16>
    "tpu.trace_start"() <{level = 10 : i32, message = "bsh,hk->bsk"}> : () -> ()
    %cst = arith.constant dense<0.000000e+00> : vector<1x8x96xf32>
    %7 = tpu.matmul %4, %6, %cst {dimension_numbers = #tpu.dot_dimension_numbers<[2], [0], [0, 1], [1], [0, 0, 0, 1, 1, 1], [], []>} : vector<1x8x32xbf16>, vector<32x96xbf16>, vector<1x8x96xf32> -> vector<1x8x96xf32>
    "tpu.trace_stop"() : () -> ()
    %c0_6 = arith.constant 0 : index
    %c0_7 = arith.constant 0 : index
    %c0_8 = arith.constant 0 : index
    %8 = vector.load %arg4[%c0_6, %c0_7, %c0_8] : memref<1x1x96xf32, #tpu.memory_space<vmem>>, vector<1x1x96xf32>
    %9 = vector.shape_cast %8 : vector<1x1x96xf32> to vector<1x96xf32>
    %10 = vector.shape_cast %9 : vector<1x96xf32> to vector<1x1x96xf32>
    %11 = vector.broadcast %10 : vector<1x1x96xf32> to vector<1x8x96xf32>
    %12 = arith.addf %7, %11 : vector<1x8x96xf32>
    %13 = vector.extract_strided_slice %12 {offsets = [0, 0, 0], sizes = [1, 8, 8], strides = [1, 1, 1]} : vector<1x8x96xf32> to vector<1x8x8xf32>
    %cst_9 = arith.constant 0.353553385 : f32
    %14 = vector.broadcast %cst_9 : f32 to vector<1x8x8xf32>
    %15 = arith.mulf %13, %14 : vector<1x8x8xf32>
    %16 = arith.truncf %15 : vector<1x8x8xf32> to vector<1x8x8xbf16>
    %17 = vector.extract_strided_slice %12 {offsets = [0, 0, 32], sizes = [1, 8, 8], strides = [1, 1, 1]} : vector<1x8x96xf32> to vector<1x8x8xf32>
    %18 = arith.truncf %17 : vector<1x8x8xf32> to vector<1x8x8xbf16>
    %19 = vector.extract_strided_slice %12 {offsets = [0, 0, 64], sizes = [1, 8, 8], strides = [1, 1, 1]} : vector<1x8x96xf32> to vector<1x8x8xf32>
    %20 = arith.truncf %19 : vector<1x8x8xf32> to vector<1x8x8xbf16>
    "tpu.trace_start"() <{level = 10 : i32, message = "bqd,bkd->bqk"}> : () -> ()
    %cst_10 = arith.constant dense<0.000000e+00> : vector<1x8x8xf32>
    %21 = tpu.matmul %16, %18, %cst_10 {dimension_numbers = #tpu.dot_dimension_numbers<[2], [2], [1], [1], [0, 0, 0, 1, 1, 1], [0], [0]>} : vector<1x8x8xbf16>, vector<1x8x8xbf16>, vector<1x8x8xf32> -> vector<1x8x8xf32>
    "tpu.trace_stop"() : () -> ()
    %cst_11 = arith.constant dense<0xFF800000> : vector<1x8xf32>
    %22 = vector.multi_reduction <maximumf>, %21, %cst_11 [2] : vector<1x8x8xf32> to vector<1x8xf32>
    %23 = vector.shape_cast %22 : vector<1x8xf32> to vector<1x8x1xf32>
    %24 = vector.broadcast %23 : vector<1x8x1xf32> to vector<1x8x8xf32>
    %25 = arith.subf %21, %24 : vector<1x8x8xf32>
    %26 = math.exp %25 : vector<1x8x8xf32>
    %cst_12 = arith.constant dense<0.000000e+00> : vector<1x8xf32>
    %27 = vector.multi_reduction <add>, %26, %cst_12 [2] : vector<1x8x8xf32> to vector<1x8xf32>
    %28 = vector.shape_cast %27 : vector<1x8xf32> to vector<1x8x1xf32>
    %29 = arith.truncf %26 : vector<1x8x8xf32> to vector<1x8x8xbf16>
    "tpu.trace_start"() <{level = 10 : i32, message = "bqk,bkd->bqd"}> : () -> ()
    %cst_13 = arith.constant dense<0.000000e+00> : vector<1x8x8xf32>
    %30 = tpu.matmul %29, %20, %cst_13 {dimension_numbers = #tpu.dot_dimension_numbers<[2], [1], [1], [2], [0, 0, 0, 1, 1, 2], [0], [0]>} : vector<1x8x8xbf16>, vector<1x8x8xbf16>, vector<1x8x8xf32> -> vector<1x8x8xf32>
    "tpu.trace_stop"() : () -> ()
    %31 = tpu.reciprocal %28 : vector<1x8x1xf32> -> vector<1x8x1xf32>
    %32 = vector.broadcast %31 : vector<1x8x1xf32> to vector<1x8x8xf32>
    %33 = arith.mulf %30, %32 : vector<1x8x8xf32>
    %34 = arith.truncf %33 : vector<1x8x8xf32> to vector<1x8x8xbf16>
    %c0_14 = arith.constant 0 : index
    %c0_15 = arith.constant 0 : index
    %c0_16 = arith.constant 0 : index
    %35 = vector.load %arg16[%c0_14, %c0_15, %c0_16] : memref<1x8x32xbf16, #tpu.memory_space<vmem>>, vector<1x8x8xbf16>
    tpu.vector_store %arg16[%c0_14, %c0_15, %c0_16], %34 {strides = array<i32>} : memref<1x8x32xbf16, #tpu.memory_space<vmem>>, vector<1x8x8xbf16>,
    %36 = vector.extract_strided_slice %12 {offsets = [0, 0, 8], sizes = [1, 8, 8], strides = [1, 1, 1]} : vector<1x8x96xf32> to vector<1x8x8xf32>
    %cst_17 = arith.constant 0.353553385 : f32
    %37 = vector.broadcast %cst_17 : f32 to vector<1x8x8xf32>
    %38 = arith.mulf %36, %37 : vector<1x8x8xf32>
    %39 = arith.truncf %38 : vector<1x8x8xf32> to vector<1x8x8xbf16>
    %40 = vector.extract_strided_slice %12 {offsets = [0, 0, 40], sizes = [1, 8, 8], strides = [1, 1, 1]} : vector<1x8x96xf32> to vector<1x8x8xf32>
    %41 = arith.truncf %40 : vector<1x8x8xf32> to vector<1x8x8xbf16>
    %42 = vector.extract_strided_slice %12 {offsets = [0, 0, 72], sizes = [1, 8, 8], strides = [1, 1, 1]} : vector<1x8x96xf32> to vector<1x8x8xf32>
    %43 = arith.truncf %42 : vector<1x8x8xf32> to vector<1x8x8xbf16>
    "tpu.trace_start"() <{level = 10 : i32, message = "bqd,bkd->bqk"}> : () -> ()
    %cst_18 = arith.constant dense<0.000000e+00> : vector<1x8x8xf32>
    %44 = tpu.matmul %39, %41, %cst_18 {dimension_numbers = #tpu.dot_dimension_numbers<[2], [2], [1], [1], [0, 0, 0, 1, 1, 1], [0], [0]>} : vector<1x8x8xbf16>, vector<1x8x8xbf16>, vector<1x8x8xf32> -> vector<1x8x8xf32>
    "tpu.trace_stop"() : () -> ()
    %cst_19 = arith.constant dense<0xFF800000> : vector<1x8xf32>
    %45 = vector.multi_reduction <maximumf>, %44, %cst_19 [2] : vector<1x8x8xf32> to vector<1x8xf32>
    %46 = vector.shape_cast %45 : vector<1x8xf32> to vector<1x8x1xf32>
    %47 = vector.broadcast %46 : vector<1x8x1xf32> to vector<1x8x8xf32>
    %48 = arith.subf %44, %47 : vector<1x8x8xf32>
    %49 = math.exp %48 : vector<1x8x8xf32>
    %cst_20 = arith.constant dense<0.000000e+00> : vector<1x8xf32>
    %50 = vector.multi_reduction <add>, %49, %cst_20 [2] : vector<1x8x8xf32> to vector<1x8xf32>
    %51 = vector.shape_cast %50 : vector<1x8xf32> to vector<1x8x1xf32>
    %52 = arith.truncf %49 : vector<1x8x8xf32> to vector<1x8x8xbf16>
    "tpu.trace_start"() <{level = 10 : i32, message = "bqk,bkd->bqd"}> : () -> ()
    %cst_21 = arith.constant dense<0.000000e+00> : vector<1x8x8xf32>
    %53 = tpu.matmul %52, %43, %cst_21 {dimension_numbers = #tpu.dot_dimension_numbers<[2], [1], [1], [2], [0, 0, 0, 1, 1, 2], [0], [0]>} : vector<1x8x8xbf16>, vector<1x8x8xbf16>, vector<1x8x8xf32> -> vector<1x8x8xf32>
    "tpu.trace_stop"() : () -> ()
    %54 = tpu.reciprocal %51 : vector<1x8x1xf32> -> vector<1x8x1xf32>
    %55 = vector.broadcast %54 : vector<1x8x1xf32> to vector<1x8x8xf32>
    %56 = arith.mulf %53, %55 : vector<1x8x8xf32>
    %57 = arith.truncf %56 : vector<1x8x8xf32> to vector<1x8x8xbf16>
    %c0_22 = arith.constant 0 : index
    %c0_23 = arith.constant 0 : index
    %c8 = arith.constant 8 : index
    %58 = vector.load %arg16[%c0_22, %c0_23, %c8] : memref<1x8x32xbf16, #tpu.memory_space<vmem>>, vector<1x8x8xbf16>
    tpu.vector_store %arg16[%c0_22, %c0_23, %c8], %57 {strides = array<i32>} : memref<1x8x32xbf16, #tpu.memory_space<vmem>>, vector<1x8x8xbf16>,
    %59 = vector.extract_strided_slice %12 {offsets = [0, 0, 16], sizes = [1, 8, 8], strides = [1, 1, 1]} : vector<1x8x96xf32> to vector<1x8x8xf32>
    %cst_24 = arith.constant 0.353553385 : f32
    %60 = vector.broadcast %cst_24 : f32 to vector<1x8x8xf32>
    %61 = arith.mulf %59, %60 : vector<1x8x8xf32>
    %62 = arith.truncf %61 : vector<1x8x8xf32> to vector<1x8x8xbf16>
    %63 = vector.extract_strided_slice %12 {offsets = [0, 0, 48], sizes = [1, 8, 8], strides = [1, 1, 1]} : vector<1x8x96xf32> to vector<1x8x8xf32>
    %64 = arith.truncf %63 : vector<1x8x8xf32> to vector<1x8x8xbf16>
    %65 = vector.extract_strided_slice %12 {offsets = [0, 0, 80], sizes = [1, 8, 8], strides = [1, 1, 1]} : vector<1x8x96xf32> to vector<1x8x8xf32>
    %66 = arith.truncf %65 : vector<1x8x8xf32> to vector<1x8x8xbf16>
    "tpu.trace_start"() <{level = 10 : i32, message = "bqd,bkd->bqk"}> : () -> ()
    %cst_25 = arith.constant dense<0.000000e+00> : vector<1x8x8xf32>
    %67 = tpu.matmul %62, %64, %cst_25 {dimension_numbers = #tpu.dot_dimension_numbers<[2], [2], [1], [1], [0, 0, 0, 1, 1, 1], [0], [0]>} : vector<1x8x8xbf16>, vector<1x8x8xbf16>, vector<1x8x8xf32> -> vector<1x8x8xf32>
    "tpu.trace_stop"() : () -> ()
    %cst_26 = arith.constant dense<0xFF800000> : vector<1x8xf32>
    %68 = vector.multi_reduction <maximumf>, %67, %cst_26 [2] : vector<1x8x8xf32> to vector<1x8xf32>
    %69 = vector.shape_cast %68 : vector<1x8xf32> to vector<1x8x1xf32>
    %70 = vector.broadcast %69 : vector<1x8x1xf32> to vector<1x8x8xf32>
    %71 = arith.subf %67, %70 : vector<1x8x8xf32>
    %72 = math.exp %71 : vector<1x8x8xf32>
    %cst_27 = arith.constant dense<0.000000e+00> : vector<1x8xf32>
    %73 = vector.multi_reduction <add>, %72, %cst_27 [2] : vector<1x8x8xf32> to vector<1x8xf32>
    %74 = vector.shape_cast %73 : vector<1x8xf32> to vector<1x8x1xf32>
    %75 = arith.truncf %72 : vector<1x8x8xf32> to vector<1x8x8xbf16>
    "tpu.trace_start"() <{level = 10 : i32, message = "bqk,bkd->bqd"}> : () -> ()
    %cst_28 = arith.constant dense<0.000000e+00> : vector<1x8x8xf32>
    %76 = tpu.matmul %75, %66, %cst_28 {dimension_numbers = #tpu.dot_dimension_numbers<[2], [1], [1], [2], [0, 0, 0, 1, 1, 2], [0], [0]>} : vector<1x8x8xbf16>, vector<1x8x8xbf16>, vector<1x8x8xf32> -> vector<1x8x8xf32>
    "tpu.trace_stop"() : () -> ()
    %77 = tpu.reciprocal %74 : vector<1x8x1xf32> -> vector<1x8x1xf32>
    %78 = vector.broadcast %77 : vector<1x8x1xf32> to vector<1x8x8xf32>
    %79 = arith.mulf %76, %78 : vector<1x8x8xf32>
    %80 = arith.truncf %79 : vector<1x8x8xf32> to vector<1x8x8xbf16>
    %c0_29 = arith.constant 0 : index
    %c0_30 = arith.constant 0 : index
    %c16 = arith.constant 16 : index
    %81 = vector.load %arg16[%c0_29, %c0_30, %c16] : memref<1x8x32xbf16, #tpu.memory_space<vmem>>, vector<1x8x8xbf16>
    tpu.vector_store %arg16[%c0_29, %c0_30, %c16], %80 {strides = array<i32>} : memref<1x8x32xbf16, #tpu.memory_space<vmem>>, vector<1x8x8xbf16>,
    %82 = vector.extract_strided_slice %12 {offsets = [0, 0, 24], sizes = [1, 8, 8], strides = [1, 1, 1]} : vector<1x8x96xf32> to vector<1x8x8xf32>
    %cst_31 = arith.constant 0.353553385 : f32
    %83 = vector.broadcast %cst_31 : f32 to vector<1x8x8xf32>
    %84 = arith.mulf %82, %83 : vector<1x8x8xf32>
    %85 = arith.truncf %84 : vector<1x8x8xf32> to vector<1x8x8xbf16>
    %86 = vector.extract_strided_slice %12 {offsets = [0, 0, 56], sizes = [1, 8, 8], strides = [1, 1, 1]} : vector<1x8x96xf32> to vector<1x8x8xf32>
    %87 = arith.truncf %86 : vector<1x8x8xf32> to vector<1x8x8xbf16>
    %88 = vector.extract_strided_slice %12 {offsets = [0, 0, 88], sizes = [1, 8, 8], strides = [1, 1, 1]} : vector<1x8x96xf32> to vector<1x8x8xf32>
    %89 = arith.truncf %88 : vector<1x8x8xf32> to vector<1x8x8xbf16>
    "tpu.trace_start"() <{level = 10 : i32, message = "bqd,bkd->bqk"}> : () -> ()
    %cst_32 = arith.constant dense<0.000000e+00> : vector<1x8x8xf32>
    %90 = tpu.matmul %85, %87, %cst_32 {dimension_numbers = #tpu.dot_dimension_numbers<[2], [2], [1], [1], [0, 0, 0, 1, 1, 1], [0], [0]>} : vector<1x8x8xbf16>, vector<1x8x8xbf16>, vector<1x8x8xf32> -> vector<1x8x8xf32>
    "tpu.trace_stop"() : () -> ()
    %cst_33 = arith.constant dense<0xFF800000> : vector<1x8xf32>
    %91 = vector.multi_reduction <maximumf>, %90, %cst_33 [2] : vector<1x8x8xf32> to vector<1x8xf32>
    %92 = vector.shape_cast %91 : vector<1x8xf32> to vector<1x8x1xf32>
    %93 = vector.broadcast %92 : vector<1x8x1xf32> to vector<1x8x8xf32>
    %94 = arith.subf %90, %93 : vector<1x8x8xf32>
    %95 = math.exp %94 : vector<1x8x8xf32>
    %cst_34 = arith.constant dense<0.000000e+00> : vector<1x8xf32>
    %96 = vector.multi_reduction <add>, %95, %cst_34 [2] : vector<1x8x8xf32> to vector<1x8xf32>
    %97 = vector.shape_cast %96 : vector<1x8xf32> to vector<1x8x1xf32>
    %98 = arith.truncf %95 : vector<1x8x8xf32> to vector<1x8x8xbf16>
    "tpu.trace_start"() <{level = 10 : i32, message = "bqk,bkd->bqd"}> : () -> ()
    %cst_35 = arith.constant dense<0.000000e+00> : vector<1x8x8xf32>
    %99 = tpu.matmul %98, %89, %cst_35 {dimension_numbers = #tpu.dot_dimension_numbers<[2], [1], [1], [2], [0, 0, 0, 1, 1, 2], [0], [0]>} : vector<1x8x8xbf16>, vector<1x8x8xbf16>, vector<1x8x8xf32> -> vector<1x8x8xf32>
    "tpu.trace_stop"() : () -> ()
    %100 = tpu.reciprocal %97 : vector<1x8x1xf32> -> vector<1x8x1xf32>
    %101 = vector.broadcast %100 : vector<1x8x1xf32> to vector<1x8x8xf32>
    %102 = arith.mulf %99, %101 : vector<1x8x8xf32>
    %103 = arith.truncf %102 : vector<1x8x8xf32> to vector<1x8x8xbf16>
    %c0_36 = arith.constant 0 : index
    %c0_37 = arith.constant 0 : index
    %c24 = arith.constant 24 : index
    %104 = vector.load %arg16[%c0_36, %c0_37, %c24] : memref<1x8x32xbf16, #tpu.memory_space<vmem>>, vector<1x8x8xbf16>
    tpu.vector_store %arg16[%c0_36, %c0_37, %c24], %103 {strides = array<i32>} : memref<1x8x32xbf16, #tpu.memory_space<vmem>>, vector<1x8x8xbf16>,
    %c0_38 = arith.constant 0 : index
    %c0_39 = arith.constant 0 : index
    %c0_40 = arith.constant 0 : index
    %105 = vector.load %arg16[%c0_38, %c0_39, %c0_40] : memref<1x8x32xbf16, #tpu.memory_space<vmem>>, vector<1x8x32xbf16>
    %c0_41 = arith.constant 0 : index
    %c0_42 = arith.constant 0 : index
    %c0_43 = arith.constant 0 : index
    %106 = vector.load %arg5[%c0_41, %c0_42, %c0_43] : memref<1x32x32xbf16, #tpu.memory_space<vmem>>, vector<1x32x32xbf16>
    %107 = vector.shape_cast %106 : vector<1x32x32xbf16> to vector<32x32xbf16>
    "tpu.trace_start"() <{level = 10 : i32, message = "bsh,hd->bsd"}> : () -> ()
    %cst_44 = arith.constant dense<0.000000e+00> : vector<1x8x32xf32>
    %108 = tpu.matmul %105, %107, %cst_44 {dimension_numbers = #tpu.dot_dimension_numbers<[2], [0], [0, 1], [1], [0, 0, 0, 1, 1, 1], [], []>} : vector<1x8x32xbf16>, vector<32x32xbf16>, vector<1x8x32xf32> -> vector<1x8x32xf32>
    "tpu.trace_stop"() : () -> ()
    %c0_45 = arith.constant 0 : index
    %c0_46 = arith.constant 0 : index
    %c0_47 = arith.constant 0 : index
    %109 = vector.load %arg6[%c0_45, %c0_46, %c0_47] : memref<1x1x32xf32, #tpu.memory_space<vmem>>, vector<1x1x32xf32>
    %110 = vector.shape_cast %109 : vector<1x1x32xf32> to vector<1x32xf32>
    %111 = vector.shape_cast %110 : vector<1x32xf32> to vector<1x1x32xf32>
    %112 = vector.broadcast %111 : vector<1x1x32xf32> to vector<1x8x32xf32>
    %113 = arith.addf %108, %112 : vector<1x8x32xf32>
    %114 = arith.addf %3, %113 : vector<1x8x32xf32>
    %cst_48 = arith.constant dense<0.000000e+00> : vector<1x8xf32>
    %115 = vector.multi_reduction <add>, %114, %cst_48 [2] : vector<1x8x32xf32> to vector<1x8xf32>
    %116 = vector.shape_cast %115 : vector<1x8xf32> to vector<1x8x1xf32>
    %cst_49 = arith.constant 3.200000e+01 : f32
    %117 = vector.broadcast %cst_49 : f32 to vector<1x8x1xf32>
    %118 = arith.divf %116, %117 : vector<1x8x1xf32>
    %119 = vector.broadcast %118 : vector<1x8x1xf32> to vector<1x8x32xf32>
    %120 = arith.subf %114, %119 : vector<1x8x32xf32>
    %121 = arith.mulf %120, %120 : vector<1x8x32xf32>
    %cst_50 = arith.constant dense<0.000000e+00> : vector<1x8xf32>
    %122 = vector.multi_reduction <add>, %121, %cst_50 [2] : vector<1x8x32xf32> to vector<1x8xf32>
    %123 = vector.shape_cast %122 : vector<1x8xf32> to vector<1x8x1xf32>
    %cst_51 = arith.constant 3.200000e+01 : f32
    %124 = vector.broadcast %cst_51 : f32 to vector<1x8x1xf32>
    %125 = arith.divf %123, %124 : vector<1x8x1xf32>
    %126 = vector.broadcast %118 : vector<1x8x1xf32> to vector<1x8x32xf32>
    %127 = arith.subf %114, %126 : vector<1x8x32xf32>
    %cst_52 = arith.constant 9.99999974E-6 : f32
    %128 = vector.broadcast %cst_52 : f32 to vector<1x8x1xf32>
    %129 = arith.addf %125, %128 : vector<1x8x1xf32>
    %130 = math.rsqrt %129 : vector<1x8x1xf32>
    %131 = vector.broadcast %130 : vector<1x8x1xf32> to vector<1x8x32xf32>
    %132 = arith.mulf %127, %131 : vector<1x8x32xf32>
    %c0_53 = arith.constant 0 : index
    %c0_54 = arith.constant 0 : index
    %c0_55 = arith.constant 0 : index
    %133 = vector.load %arg7[%c0_53, %c0_54, %c0_55] : memref<1x1x32xf32, #tpu.memory_space<vmem>>, vector<1x1x32xf32>
    %134 = vector.shape_cast %133 : vector<1x1x32xf32> to vector<1x32xf32>
    %135 = vector.shape_cast %134 : vector<1x32xf32> to vector<1x1x32xf32>
    %136 = vector.broadcast %135 : vector<1x1x32xf32> to vector<1x8x32xf32>
    %137 = arith.mulf %132, %136 : vector<1x8x32xf32>
    %c0_56 = arith.constant 0 : index
    %c0_57 = arith.constant 0 : index
    %c0_58 = arith.constant 0 : index
    %138 = vector.load %arg8[%c0_56, %c0_57, %c0_58] : memref<1x1x32xf32, #tpu.memory_space<vmem>>, vector<1x1x32xf32>
    %139 = vector.shape_cast %138 : vector<1x1x32xf32> to vector<1x32xf32>
    %140 = vector.shape_cast %139 : vector<1x32xf32> to vector<1x1x32xf32>
    %141 = vector.broadcast %140 : vector<1x1x32xf32> to vector<1x8x32xf32>
    %142 = arith.addf %137, %141 : vector<1x8x32xf32>
    %143 = arith.truncf %142 : vector<1x8x32xf32> to vector<1x8x32xbf16>
    %c0_59 = arith.constant 0 : index
    %c0_60 = arith.constant 0 : index
    %c0_61 = arith.constant 0 : index
    %144 = vector.load %arg9[%c0_59, %c0_60, %c0_61] : memref<1x32x64xbf16, #tpu.memory_space<vmem>>, vector<1x32x64xbf16>
    %145 = vector.shape_cast %144 : vector<1x32x64xbf16> to vector<32x64xbf16>
    "tpu.trace_start"() <{level = 10 : i32, message = "bsh,hp->bsp"}> : () -> ()
    %cst_62 = arith.constant dense<0.000000e+00> : vector<1x8x64xf32>
    %146 = tpu.matmul %143, %145, %cst_62 {dimension_numbers = #tpu.dot_dimension_numbers<[2], [0], [0, 1], [1], [0, 0, 0, 1, 1, 1], [], []>} : vector<1x8x32xbf16>, vector<32x64xbf16>, vector<1x8x64xf32> -> vector<1x8x64xf32>
    "tpu.trace_stop"() : () -> ()
    %c0_63 = arith.constant 0 : index
    %c0_64 = arith.constant 0 : index
    %c0_65 = arith.constant 0 : index
    %147 = vector.load %arg10[%c0_63, %c0_64, %c0_65] : memref<1x1x64xf32, #tpu.memory_space<vmem>>, vector<1x1x64xf32>
    %148 = vector.shape_cast %147 : vector<1x1x64xf32> to vector<1x64xf32>
    %149 = vector.shape_cast %148 : vector<1x64xf32> to vector<1x1x64xf32>
    %150 = vector.broadcast %149 : vector<1x1x64xf32> to vector<1x8x64xf32>
    %151 = arith.addf %146, %150 : vector<1x8x64xf32>
    %cst_66 = arith.constant 0.000000e+00 : f32
    %152 = vector.broadcast %cst_66 : f32 to vector<1x8x64xf32>
    %153 = arith.maximumf %151, %152 : vector<1x8x64xf32>
    %154 = arith.truncf %153 : vector<1x8x64xf32> to vector<1x8x64xbf16>
    %c0_67 = arith.constant 0 : index
    %c0_68 = arith.constant 0 : index
    %c0_69 = arith.constant 0 : index
    %155 = vector.load %arg11[%c0_67, %c0_68, %c0_69] : memref<1x64x32xbf16, #tpu.memory_space<vmem>>, vector<1x64x32xbf16>
    %156 = vector.shape_cast %155 : vector<1x64x32xbf16> to vector<64x32xbf16>
    "tpu.trace_start"() <{level = 10 : i32, message = "bsp,ph->bsh"}> : () -> ()
    %cst_70 = arith.constant dense<0.000000e+00> : vector<1x8x32xf32>
    %157 = tpu.matmul %154, %156, %cst_70 {dimension_numbers = #tpu.dot_dimension_numbers<[2], [0], [0, 1], [1], [0, 0, 0, 1, 1, 1], [], []>} : vector<1x8x64xbf16>, vector<64x32xbf16>, vector<1x8x32xf32> -> vector<1x8x32xf32>
    "tpu.trace_stop"() : () -> ()
    %c0_71 = arith.constant 0 : index
    %c0_72 = arith.constant 0 : index
    %c0_73 = arith.constant 0 : index
    %158 = vector.load %arg12[%c0_71, %c0_72, %c0_73] : memref<1x1x32xf32, #tpu.memory_space<vmem>>, vector<1x1x32xf32>
    %159 = vector.shape_cast %158 : vector<1x1x32xf32> to vector<1x32xf32>
    %160 = vector.shape_cast %159 : vector<1x32xf32> to vector<1x1x32xf32>
    %161 = vector.broadcast %160 : vector<1x1x32xf32> to vector<1x8x32xf32>
    %162 = arith.addf %157, %161 : vector<1x8x32xf32>
    %163 = arith.addf %142, %162 : vector<1x8x32xf32>
    %cst_74 = arith.constant dense<0.000000e+00> : vector<1x8xf32>
    %164 = vector.multi_reduction <add>, %163, %cst_74 [2] : vector<1x8x32xf32> to vector<1x8xf32>
    %165 = vector.shape_cast %164 : vector<1x8xf32> to vector<1x8x1xf32>
    %cst_75 = arith.constant 3.200000e+01 : f32
    %166 = vector.broadcast %cst_75 : f32 to vector<1x8x1xf32>
    %167 = arith.divf %165, %166 : vector<1x8x1xf32>
    %168 = vector.broadcast %167 : vector<1x8x1xf32> to vector<1x8x32xf32>
    %169 = arith.subf %163, %168 : vector<1x8x32xf32>
    %170 = arith.mulf %169, %169 : vector<1x8x32xf32>
    %cst_76 = arith.constant dense<0.000000e+00> : vector<1x8xf32>
    %171 = vector.multi_reduction <add>, %170, %cst_76 [2] : vector<1x8x32xf32> to vector<1x8xf32>
    %172 = vector.shape_cast %171 : vector<1x8xf32> to vector<1x8x1xf32>
    %cst_77 = arith.constant 3.200000e+01 : f32
    %173 = vector.broadcast %cst_77 : f32 to vector<1x8x1xf32>
    %174 = arith.divf %172, %173 : vector<1x8x1xf32>
    %175 = vector.broadcast %167 : vector<1x8x1xf32> to vector<1x8x32xf32>
    %176 = arith.subf %163, %175 : vector<1x8x32xf32>
    %cst_78 = arith.constant 9.99999974E-6 : f32
    %177 = vector.broadcast %cst_78 : f32 to vector<1x8x1xf32>
    %178 = arith.addf %174, %177 : vector<1x8x1xf32>
    %179 = math.rsqrt %178 : vector<1x8x1xf32>
    %180 = vector.broadcast %179 : vector<1x8x1xf32> to vector<1x8x32xf32>
    %181 = arith.mulf %176, %180 : vector<1x8x32xf32>
    %c0_79 = arith.constant 0 : index
    %c0_80 = arith.constant 0 : index
    %c0_81 = arith.constant 0 : index
    %182 = vector.load %arg13[%c0_79, %c0_80, %c0_81] : memref<1x1x32xf32, #tpu.memory_space<vmem>>, vector<1x1x32xf32>
    %183 = vector.shape_cast %182 : vector<1x1x32xf32> to vector<1x32xf32>
    %184 = vector.shape_cast %183 : vector<1x32xf32> to vector<1x1x32xf32>
    %185 = vector.broadcast %184 : vector<1x1x32xf32> to vector<1x8x32xf32>
    %186 = arith.mulf %181, %185 : vector<1x8x32xf32>
    %c0_82 = arith.constant 0 : index
    %c0_83 = arith.constant 0 : index
    %c0_84 = arith.constant 0 : index
    %187 = vector.load %arg14[%c0_82, %c0_83, %c0_84] : memref<1x1x32xf32, #tpu.memory_space<vmem>>, vector<1x1x32xf32>
    %188 = vector.shape_cast %187 : vector<1x1x32xf32> to vector<1x32xf32>
    %189 = vector.shape_cast %188 : vector<1x32xf32> to vector<1x1x32xf32>
    %190 = vector.broadcast %189 : vector<1x1x32xf32> to vector<1x8x32xf32>
    %191 = arith.addf %186, %190 : vector<1x8x32xf32>
    %c0_85 = arith.constant 0 : index
    %c0_86 = arith.constant 0 : index
    %c0_87 = arith.constant 0 : index
    %192 = vector.load %arg15[%c0_85, %c0_86, %c0_87] : memref<1x8x32xf32, #tpu.memory_space<vmem>>, vector<1x8x32xf32>
    tpu.vector_store %arg15[%c0_85, %c0_86, %c0_87], %191 {strides = array<i32>} : memref<1x8x32xf32, #tpu.memory_space<vmem>>, vector<1x8x32xf32>,
    return
  }
  func.func @transform_0(%arg0: i32, %arg1: i32) -> (i32, i32, i32) {
    %c0_i32 = arith.constant 0 : i32
    %c0_i32_0 = arith.constant 0 : i32
    %c0_i32_1 = arith.constant 0 : i32
    return %arg0, %c0_i32, %c0_i32_0 : i32, i32, i32
  }
  func.func @transform_1(%arg0: i32, %arg1: i32) -> (i32, i32, i32) {
    %c0_i32 = arith.constant 0 : i32
    %c0_i32_0 = arith.constant 0 : i32
    %c0_i32_1 = arith.constant 0 : i32
    return %arg1, %c0_i32, %c0_i32_0 : i32, i32, i32
  }
  func.func @transform_2(%arg0: i32, %arg1: i32) -> (i32, i32, i32) {
    %c0_i32 = arith.constant 0 : i32
    %c0_i32_0 = arith.constant 0 : i32
    %c0_i32_1 = arith.constant 0 : i32
    return %arg1, %c0_i32, %c0_i32_0 : i32, i32, i32
  }
  func.func @transform_3(%arg0: i32, %arg1: i32) -> (i32, i32, i32) {
    %c0_i32 = arith.constant 0 : i32
    %c0_i32_0 = arith.constant 0 : i32
    %c0_i32_1 = arith.constant 0 : i32
    return %arg1, %c0_i32, %c0_i32_0 : i32, i32, i32
  }
  func.func @transform_4(%arg0: i32, %arg1: i32) -> (i32, i32, i32) {
    %c0_i32 = arith.constant 0 : i32
    %c0_i32_0 = arith.constant 0 : i32
    %c0_i32_1 = arith.constant 0 : i32
    return %arg1, %c0_i32, %c0_i32_0 : i32, i32, i32
  }
  func.func @transform_5(%arg0: i32, %arg1: i32) -> (i32, i32, i32) {
    %c0_i32 = arith.constant 0 : i32
    %c0_i32_0 = arith.constant 0 : i32
    %c0_i32_1 = arith.constant 0 : i32
    return %arg1, %c0_i32, %c0_i32_0 : i32, i32, i32
  }
  func.func @transform_6(%arg0: i32, %arg1: i32) -> (i32, i32, i32) {
    %c0_i32 = arith.constant 0 : i32
    %c0_i32_0 = arith.constant 0 : i32
    %c0_i32_1 = arith.constant 0 : i32
    return %arg1, %c0_i32, %c0_i32_0 : i32, i32, i32
  }
  func.func @transform_7(%arg0: i32, %arg1: i32) -> (i32, i32, i32) {
    %c0_i32 = arith.constant 0 : i32
    %c0_i32_0 = arith.constant 0 : i32
    %c0_i32_1 = arith.constant 0 : i32
    return %arg1, %c0_i32, %c0_i32_0 : i32, i32, i32
  }
  func.func @transform_8(%arg0: i32, %arg1: i32) -> (i32, i32, i32) {
    %c0_i32 = arith.constant 0 : i32
    %c0_i32_0 = arith.constant 0 : i32
    %c0_i32_1 = arith.constant 0 : i32
    return %arg1, %c0_i32, %c0_i32_0 : i32, i32, i32
  }
  func.func @transform_9(%arg0: i32, %arg1: i32) -> (i32, i32, i32) {
    %c0_i32 = arith.constant 0 : i32
    %c0_i32_0 = arith.constant 0 : i32
    %c0_i32_1 = arith.constant 0 : i32
    return %arg1, %c0_i32, %c0_i32_0 : i32, i32, i32
  }
  func.func @transform_10(%arg0: i32, %arg1: i32) -> (i32, i32, i32) {
    %c0_i32 = arith.constant 0 : i32
    %c0_i32_0 = arith.constant 0 : i32
    %c0_i32_1 = arith.constant 0 : i32
    return %arg1, %c0_i32, %c0_i32_0 : i32, i32, i32
  }
  func.func @transform_11(%arg0: i32, %arg1: i32) -> (i32, i32, i32) {
    %c0_i32 = arith.constant 0 : i32
    %c0_i32_0 = arith.constant 0 : i32
    %c0_i32_1 = arith.constant 0 : i32
    return %arg1, %c0_i32, %c0_i32_0 : i32, i32, i32
  }
  func.func @transform_12(%arg0: i32, %arg1: i32) -> (i32, i32, i32) {
    %c0_i32 = arith.constant 0 : i32
    %c0_i32_0 = arith.constant 0 : i32
    %c0_i32_1 = arith.constant 0 : i32
    return %arg1, %c0_i32, %c0_i32_0 : i32, i32, i32
  }
  func.func @transform_13(%arg0: i32, %arg1: i32) -> (i32, i32, i32) {
    %c0_i32 = arith.constant 0 : i32
    %c0_i32_0 = arith.constant 0 : i32
    %c0_i32_1 = arith.constant 0 : i32
    return %arg0, %c0_i32, %c0_i32_0 : i32, i32, i32
  }
}

</mosaic_0001>

<bundles_post_ra>
// kernel: encoder_forward.1
= control target key start
LH: loop header
LB: loop body
LE: loop exit
PB: predicated region body
PF: predicated region fallthrough
CT: control target
= control target key end

     0   :  { %s2158_s0 = inlined_call_operand.hbm [shape: f32[2,8,32], index: 0, kind: input, shape index: {}, may-alias: {0,13}]   ;;  %s2159_s1 = inlined_call_operand.vmem [shape: bf16[2,32,96], index: 1, kind: input, shape index: {}]   ;;  %s2160_s2 = inlined_call_operand.vmem [shape: f32[2,1,96], index: 2, kind: input, shape index: {}]   ;;  %s2161_s3 = inlined_call_operand.vmem [shape: bf16[2,32,32], index: 3, kind: input, shape index: {}]   ;;  %s2162_s4 = inlined_call_operand.vmem [shape: f32[2,1,32], index: 4, kind: input, shape index: {}]   ;;  %s2163_s5 = inlined_call_operand.vmem [shape: f32[2,1,32], index: 5, kind: input, shape index: {}]   ;;  %s2164_s6 = inlined_call_operand.vmem [shape: f32[2,1,32], index: 6, kind: input, shape index: {}]   ;;  %s2165_s7 = inlined_call_operand.vmem [shape: bf16[2,32,64], index: 7, kind: input, shape index: {}]   ;;  %s2166_s8 = inlined_call_operand.vmem [shape: f32[2,1,64], index: 8, kind: input, shape index: {}]   ;;  %s2167_s9 = inlined_call_operand.vmem [shape: bf16[2,64,32], index: 9, kind: input, shape index: {}]   ;;  %s2168_s10 = inlined_call_operand.vmem [shape: f32[2,1,32], index: 10, kind: input, shape index: {}]   ;;  %s2169_s11 = inlined_call_operand.vmem [shape: f32[2,1,32], index: 11, kind: input, shape index: {}]   ;;  %s2170_s12 = inlined_call_operand.vmem [shape: f32[2,1,32], index: 12, kind: input, shape index: {}]   ;;  %s2171_s13 = inlined_call_operand.hbm [shape: f32[2,8,32], index: 13, kind: output, shape index: {}, may-alias: {0,13}]  }
   0x1   :  { %2185 = sst [smem:[#allocation22_spill]] %s2158_s0 }
   0x2   :  { %2186 = sst [smem:[#allocation23_spill]] %s2159_s1 }
   0x3   :  { %2187 = sst [smem:[#allocation24_spill]] %s2160_s2 }
   0x4   :  { %2188 = sst [smem:[#allocation25_spill]] %s2161_s3 }
   0x5   :  { %2189 = sst [smem:[#allocation26_spill]] %s2164_s6 }
   0x6   :  { %2190 = sst [smem:[#allocation27_spill]] %s2165_s7 }
   0x7   :  { %2191 = sst [smem:[#allocation28_spill]] %s2168_s10 }
   0x8   :  { %2192 = sst [smem:[#allocation29_spill]] %s2169_s11 }
   0x9   :  { %2193 = sst [smem:[#allocation30_spill]] %s2170_s12 }
   0xa   :  { %2194 = sst [smem:[#allocation31_spill]] %s2171_s13 }
   0xb   :  { %18 = vsyncpa [#allocation4], 0 }
   0xc   :  { %20 = vsyncpa [#allocation4 + $0x1], 0 }
   0xd   :  { %21 = vsyncpa [#allocation5], 0 }
   0xe   :  { %23 = vsyncpa [#allocation5 + $0x1], 0  ;;  %s1864_s25 = smov 0   ;;  %s1866_s26 = smov 0  }
   0xf   :  { %s1868_s27 = smov 0   ;;  %s1870_s28 = smov 0  }
  0x10   :  { %s1872_s29 = smov 0   ;;  %s1874_s30 = smov 0  }
  0x11   :  { %s1876_s14 = smov 0   ;;  %s1878_s15 = smov 0  }
  0x12 LB: > { %2195 = sst [smem:[#allocation9_spill]] %s1749_s25  ;;  %s1438_s16 = sadd.s32 4294967295, %s1777_s15   ;;  %s1777_s15 = sphi %s1878_s15, %s29_s15   ;;  %s1773_s14 = sphi %s1876_s14, %s2242_s14   ;;  %s1769_s30 = sphi %s1874_s30, %s2241_s30   ;;  %s1765_s29 = sphi %s1872_s29, %s2240_s29   ;;  %s1761_s28 = sphi %s1870_s28, %s2239_s28   ;;  %s1757_s27 = sphi %s1868_s27, %s2238_s27   ;;  %s1753_s26 = sphi %s1866_s26, %s2237_s26   ;;  %s1749_s25 = sphi %s1864_s25, %s2236_s25  }
  0x13   : > { %2196 = sst [smem:[#allocation10_spill]] %s1753_s26  ;;  %s1439_s17 = sadd.s32 4294967294, %s1777_s15  }
  0x14   : > { %2197 = sst [smem:[#allocation11_spill]] %s1757_s27  ;;  %s38_s18 = sadd.s32 1, %s1769_s30 }
  0x15   : > { %2198 = sst [smem:[#allocation12_spill]] %s1765_s29  ;;  %s41_s19 = sadd.s32 1, %s1773_s14 }
  0x16   : > { %2199 = sst [smem:[#allocation13_spill]] %s1769_s30  ;;  %p39_p0 = scmp.ge.s32.totalorder %s38_s18, 2 }
  0x17   : > { %2200 = sst [smem:[#allocation14_spill]] %s1773_s14  ;;  %s48_s20 = sadd.s32 1, %s1757_s27 }
  0x18   : > { %2201 = sst [smem:[#allocation15_spill]] %s1777_s15  ;;  %p55_p1 = scmp.ne.s32.totalorder %s1757_s27, %s1753_s26 }
  0x19   : > { %p56_p2 = scmp.eq.s32.totalorder %s1777_s15, 0  ;;  %s2244_s18 = smov (%p39_p0, %s38_s18), 0 }
  0x1a   : > { %2202 = sst [smem:[#allocation16_spill]] %s2244_s18  ;;  %s2246_s19 = smov (!%p39_p0, %s41_s19), %s1773_s14 }
  0x1b   : > { %p1915_p3 = por %p56_p2, %p55_p1  ;;  %p61_p4 = scmp.ne.s32.totalorder %s1753_s26, %s1749_s25 }
  0x1c   : > { %p43_p5 = scmp.ge.s32.totalorder %s2246_s19, 2  ;;  %p62_p6 = scmp.eq.s32.totalorder %s1438_s16, 0 }
  0x1d   : > { %p397_p7 = scmp.eq.s32.totalorder %s1438_s16, 3  ;;  %p403_p8 = scmp.eq.s32.totalorder %s1439_s17, 3 }
  0x1e   : > { %s2248_s19 = smov (%p43_p5, %s2246_s19), 0  ;;  %p1923_p9 = por %p62_p6, %p61_p4 }
  0x1f   : > { %2204 = sst [smem:[#allocation17_spill]] %s2248_s19  ;;  %p1927_p10 = por %p397_p7, %p55_p1 }
  0x20   : > { %s45_s24 = ssub.s32 %s1773_s14, %s2248_s19  ;;  %p1933_p11 = por %p403_p8, %p61_p4 }
  0x21   : > { %s2206_s23 = scalar_select %p1927_p10, 1, 0 }
  0x22   : > { %s2208_s18 = scalar_select %p1933_p11, 1, 0 }
  0x23   : > { %2207 = sst [smem:[#allocation18_spill]] %s2206_s23  ;;  %p46_p12 = scmp.eq.s32.totalorder %s45_s24, 0 }
  0x24   : > { %2209 = sst [smem:[#allocation19_spill]] %s2208_s18  ;;  %p1538_p13 = scmp.lt.s32.totalorder %s1777_s15, 4 }
  0x25   : > { %s423_s16 = sand.u32 1, %s1757_s27   ;;  %s1443_s25 = sshll.u32 %s1773_s14, 3 }
  0x26   : > { %s1940_s17 = scalar_select %p46_p12, %s1757_s27, %s48_s20  }
  0x27   : > { %s1442_s30 = sshll.u32 %s423_s16, 3  ;;  %s2211_s0 = sld [smem:[#allocation22_spill]] }
  0x28   : > { %2210 = sst [smem:[#allocation20_spill]] %s1940_s17  ;;  %s427_s11 = scalar_lea.vmem [#allocation3], %s1442_s30 }
  0x29   : > { %s435_s23 = sshll.u32 %s427_s11, 4  ;;  %p1531_p0 = pnand %p1538_p13, %p1915_p3  ;;  %s436_s23 = int_to_ptr.vmem [resolvable:$true] %s435_s23 }
  0x2a   : > { %p1444_p1 = scmp.ge.s32.totalorder %s1777_s15, 1  ;;  %p520_p2 = scmp.lt.s32.totalorder %s1777_s15, 5 }
  0x2b   : > { %s424_s24 = scalar_lea.sflag [#allocation4], %s423_s16 }
  0x2c   : > { %p521_p4 = pnand %p1444_p1, %p520_p2 }
  0x2d   : > { %s431_s12 = scalar_lea.hbm %s2211_s0, %s1443_s25 }
  0x2e   : > { %s433_s10 = sshll.u32 %s431_s12, 4  ;;  %524 = sbr.rel (%p521_p4) target bundleno = 1827 (0x723), region = 72  ;;  %s434_s10 = int_to_ptr.hbm [resolvable:$true] %s433_s10 }
  0x2f   : > { %1533 = dma.hbm_to_vmem [thread:$0]  (!%p1531_p0), %s434_s10, 128, %s436_s23, %s424_s24  }
  0x33   : > { %s1951_s20 = sand.u32 1, %s1753_s26  }
  0x34   : > { %2212 = sst [smem:[#allocation21_spill]] %s1951_s20  ;;  %s1445_s13 = sshll.u32 %s1951_s20, 3 }
  0x35   : > { %s527_s25 = scalar_lea.sflag [#allocation4], %s1951_s20  ;;  %s530_s11 = scalar_lea.vmem [#allocation3], %s1445_s13 }
  0x36   : > { %1740 = dma.done.wait (%p1923_p9), %s527_s25, 128  }
  0x37   : > { %1742 = vsyncadd (%p1923_p9), %s527_s25, 4294967168  ;;  %p618_p3 = scmp.lt.s32.totalorder %s1761_s28, 1  ;;  %s2213_s2 = sld [smem:[#allocation24_spill]] }
  0x38   : > { %s2214_s1 = sld [smem:[#allocation23_spill]]  ;;  %s2015_s24 = scalar_lea.vmem [#allocation6], %s1445_s13 }
  0x39   : > { %s1961_s10 = scalar_select %p618_p3, %s1761_s28, 1 }
  0x3a   : > { %s2215_s3 = sld [smem:[#allocation25_spill]]  ;;  %p1455_p5 = scmp.ne.s32.totalorder %s1761_s28, 0 }
  0x3b   : > { %s1512_s12 = sshll.u32 %s1961_s10, 4  ;;  %s2217_s7 = sld [smem:[#allocation27_spill]] }
  0x3c   : > { %s2218_s18 = sld [smem:[#allocation28_spill]] }
  0x3d   : > { %s625_s21 = scalar_lea.vmem %s2213_s2, %s1961_s10  ;;  %s2219_s20 = sld [smem:[#allocation29_spill]] }
  0x3e   : > { %s622_s16 = scalar_lea.vmem %s2214_s1, %s1512_s12  ;;  %s647_s1 = scalar_lea.vmem %s2166_s8, %s1961_s10 }
  0x40   : > { %s1974_s0 = scalar_lea.vmem %s2215_s3, %s1512_s12  ;;  %s1515_s3 = sshll.u32 %s1961_s10, 5 }
  0x41   : > { %s1991_s23 = scalar_lea.vmem %s2217_s7, %s1512_s12  ;;  %s2001_s17 = scalar_lea.vmem %s2167_s9, %s1515_s3 }
  0x42   : > { %s655_s15 = scalar_lea.vmem %s2218_s18, %s1961_s10  ;;  %s2220_s7 = sld [smem:[#allocation30_spill]] }
  0x43   : > { %s658_s2 = scalar_lea.vmem %s2219_s20, %s1961_s10 }
  0x44   : > { %666 = sbr.rel (%p1455_p5) target bundleno = 75 (0x4b), region = 80 }
  0x48   : > { %s661_s6 = scalar_lea.vmem %s2220_s7, %s1961_s10 }
  0x49   : > { %v667_v0 = vld [vmem:[%s530_s11] sm:$0xff]  ;;  %vm668_vm0 = vcmask 261120  }
  0x4a   : > { %669 = vst.msk [vmem:[%s2015_s24] sm:$0xff] %vm668_vm0, %v667_v0 }
  0x4b PF: > { %v1517_v1 = vld [vmem:[%s622_s16 + $0x8] sm:$0xff]  ;;  %v1516_v2 = vld [vmem:[%s622_s16] sm:$0xff]  ;;  %vm692_vm1 = vcmask 261120   ;;  %s1779_s3 = smov 96   ;;  %s1780_s7 = smov 104   ;;  %vm717_vm2 = vcmask 64512  }
  0x4c   : > { %702 = vmatpush.bf16.msra.mxu0 %v1517_v1  ;;  %v1619_v5 = vld [vmem:[%s625_s21] ss:$0 sm:$0xff]  ;;  %s1781_s28 = smov 120   ;;  %s1782_s18 = smov 88   ;;  %vm752_vm3 = vcmask 1043456  }
  0x4d   : > { %s1783_s20 = smov 80   ;;  %s1784_s13 = smov 72  }
  0x4e   : > { %s1785_s11 = smov 112   ;;  %s1786_s21 = smov 64  }
  0x4f   : > { %s1787_s16 = smov 56   ;;  %s1788_s30 = smov 48  }
  0x50   : > { %703 = vmatpush.bf16.msra.mxu0 %v1516_v2  ;;  %s1789_s25 = smov 40   ;;  %s1790_s14 = smov 8  }
  0x51   : > { %v2020_v3 = vld [vmem:[%s2015_s24] sm:$0xff]  ;;  %s1791_s19 = smov 16   ;;  %s1792_s26 = smov 24  }
  0x52   : > { %v671_v4 = vpack.c.bf16 %v2020_v3, %v2020_v3  ;;  %s2221_s12 = scalar_lea.vmem %s2162_s4, %s1961_s10  ;;  %s2222_s22 = scalar_lea.vmem %s2163_s5, %s1961_s10 }
  0x53   : > { %s2229_s27 = sld [smem:[#allocation31_spill]] }
  0x54   : > { %1464 = vmatmul.msk.bf16.vlgmr.msra.gmra.mxu0 %vm692_vm1, %v671_v4 }
  0xd1   : > { %v705_v6 = vpop.f32.mrf.mxu0 }
  0xd2   : > { %v706_v7 = vadd.f32 %v1619_v5, %v705_v6 }
  0xd4   : > { %v709_v8 = vmul.f32 0.35355338, %v706_v7  ;;  %v711_v9 = vpack.c.bf16 %v706_v7, %v706_v7 }
  0xd6   : > { %v710_v10 = vpack.c.bf16 %v709_v8, %v709_v8  ;;  %v713_v11 = vunpack.c.l.b16 %v711_v9 }
  0xd8   : > { %v2025_v12 = vpack.c.b16 %v713_v11, %v713_v11  ;;  %v788_v13 = vunpack.c.l.b16 %v710_v10 }
  0xd9   : > { %v707_v14 = vpop.f32.mrf.mxu0 }
  0xda   : > { %715 = vrot.lane.b32.xlu0 %v2025_v12, %s1779_s3  ;;  %v789_v15 = vpack.c.b16 %v788_v13, %v788_v13 }
  0xdc   : > { %942 = vrot.lane.b32.xlu2 %v789_v15, %s1780_s7  ;;  %790 = vrot.lane.b32.xlu1 %v789_v15, %s1781_s28  ;;  %s2223_s28 = sld [smem:[#allocation26_spill]]  ;;  %s1234_s7 = sshll.u32 %s2015_s24, 4  ;;  %s1235_s7 = int_to_ptr.vmem [resolvable:$true] %s1234_s7 }
  0xe2   : > { %792 = vrot.lane.b32.xlu0 %v2025_v12, %s1782_s18  ;;  %s2224_s18 = scalar_lea.vmem %s2223_s28, %s1961_s10 }
  0xe4   : > { %868 = vrot.lane.b32.xlu2 %v2025_v12, %s1783_s20  ;;  %944 = vrot.lane.b32.xlu1 %v2025_v12, %s1784_s13 }
  0xea   : > { %866 = vrot.lane.b32.xlu0 %v789_v15, %s1785_s11 }
  0xec   : > { %747 = vrot.lane.b32.xlu2 %v2025_v12, %s1786_s21 }
  0xf4   : > { %823 = vrot.lane.b32.xlu2 %v2025_v12, %s1787_s16 }
 0x136   : > { %v943_v16 = vpop.permute.xlu2 %942 }
 0x13e   : > { %v869_v17 = vpop.permute.xlu2 %868 }
 0x13f   : > { %v874_v18 = vsel %vm717_vm2, %v869_v17, 0 }
 0x140   : > { %883 = vmatpush.bf16.xpose.msrb.mxu0 %v874_v18 }
 0x146   : > { %v748_v19 = vpop.permute.xlu2 %747 }
 0x147   : > { %v754_v20 = vsel %vm752_vm3, %v748_v19, 0 }
 0x148   : > { %763 = vmatpush.bf16.msra.mxu2 %v754_v20 }
 0x14c   : > { %v716_v21 = vpop.permute.xlu0 %715 }
 0x14d   : > { %v722_v22 = vsel %vm717_vm2, %v716_v21, 0 }
 0x14e   : > { %731 = vmatpush.bf16.xpose.msra.mxu1 %v722_v22  ;;  %v824_v23 = vpop.permute.xlu2 %823  ;;  %v791_v24 = vpop.permute.xlu1 %790 }
 0x14f   : > { %v829_v25 = vsel %vm752_vm3, %v824_v23, 0 }
 0x150   : > { %838 = vmatpush.bf16.msrb.mxu2 %v829_v25 }
 0x154   : > { %v793_v26 = vpop.permute.xlu0 %792 }
 0x155   : > { %1465 = vmatmul.msk.bf16.vlgmr.msra.gmra.mxu1 %vm717_vm2, %v710_v10  ;;  %v798_v27 = vsel %vm717_vm2, %v793_v26, 0 }
 0x156   : > { %807 = vmatpush.bf16.xpose.msra.mxu3 %v798_v27  ;;  %v945_v28 = vpop.permute.xlu1 %944 }
 0x157   : > { %v950_v29 = vsel %vm717_vm2, %v945_v28, 0 }
 0x15c   : > { %v867_v30 = vpop.permute.xlu0 %866 }
 0x15d   : > { %1467 = vmatmul.msk.bf16.vlgmr.msra.gmra.mxu3 %vm717_vm2, %v791_v24  ;;  %1469 = vmatmul.msk.bf16.vlgmr.msrb.gmra.mxu0 %vm717_vm2, %v867_v30 }
 0x15e   : > { %959 = vmatpush.bf16.xpose.msrb.mxu3 %v950_v29 }
 0x16d   : > { %1471 = vmatmul.msk.bf16.vlgmr.msrb.gmra.mxu3 %vm717_vm2, %v943_v16 }
 0x1d2   : > { %v733_v31 = vpop.f32.mrf.mxu1 }
 0x1d3   : > { %v737_v32 = vsel %vm717_vm2, %v733_v31, -inf }
 0x1d4   : > { %738 = vmax.xlane.f32.xlu1 %v737_v32 }
 0x1da   : > { %v735_v33 = vpop.f32.mrf.mxu1  ;;  %v885_v34 = vpop.f32.mrf.mxu0 }
 0x1db   : > { %v889_v35 = vsel %vm717_vm2, %v885_v34, -inf }
 0x1dc   : > { %890 = vmax.xlane.f32.xlu1 %v889_v35 }
 0x1e0   : > { %v809_v36 = vpop.f32.mrf.mxu3 }
 0x1e1   : > { %v813_v37 = vsel %vm717_vm2, %v809_v36, -inf }
 0x1e2   : > { %v887_v38 = vpop.f32.mrf.mxu0  ;;  %814 = vmax.xlane.f32.xlu0 %v813_v37 }
 0x1e8   : > { %v811_v39 = vpop.f32.mrf.mxu3 }
 0x1f0   : > { %v961_v40 = vpop.f32.mrf.mxu3 }
 0x1f1   : > { %v965_v41 = vsel %vm717_vm2, %v961_v40, -inf }
 0x1f2   : > { %966 = vmax.xlane.f32.xlu2 %v965_v41 }
 0x1f5   : > { %899 = vrot.lane.b32.xlu1 %v2025_v12, %s1788_s30 }
 0x1f6   : > { %975 = vrot.lane.b32.xlu0 %v2025_v12, %s1789_s25 }
 0x1f8   : > { %v963_v42 = vpop.f32.mrf.mxu3 }
 0x247   : > { %v739_v43 = vpop.xlane.xlu1 %738 }
 0x248   : > { %v740_v44 = vsub.f32 %v733_v31, %v739_v43 }
 0x24a   : > { %v741_v45 = vmul.f32 1.442695, %v740_v44 }
 0x24c   : > { %1627 = vpow2.f32 %v741_v45 }
 0x24f   : > { %v891_v48 = vpop.xlane.xlu1 %890 }
 0x250   : > { %v892_v51 = vsub.f32 %v885_v34, %v891_v48 }
 0x252   : > { %v1628_v46 = vpop.eup %1627  ;;  %v893_v53 = vmul.f32 1.442695, %v892_v51 }
 0x253   : > { %v746_v47 = vpack.c.bf16 %v1628_v46, %v1628_v46  ;;  %v743_v6 = vsel %vm717_vm2, %v1628_v46, 0.0 }
 0x255   : > { %v815_v49 = vpop.xlane.xlu0 %814  ;;  %1466 = vmatmul.msk.bf16.vlgmr.msra.gmra.mxu2 %vm717_vm2, %v746_v47 }
 0x256   : > { %v816_v50 = vsub.f32 %v809_v36, %v815_v49 }
 0x258   : > { %v817_v52 = vmul.f32 1.442695, %v816_v50 }
 0x25a   : > { %1629 = vpow2.f32 %v817_v52 }
 0x25b   : > { %1631 = vpow2.f32 %v893_v53 }
 0x260   : > { %v1630_v54 = vpop.eup %1629 }
 0x261   : > { %v819_v55 = vsel %vm717_vm2, %v1630_v54, 0.0  ;;  %v822_v56 = vpack.c.bf16 %v1630_v54, %v1630_v54  ;;  %v1632_v58 = vpop.eup %1631 }
 0x262   : > { %820 = vadd.xlane.f32.xlu2 %v819_v55  ;;  %v895_v1 = vsel %vm717_vm2, %v1632_v58, 0.0  ;;  %v898_v2 = vpack.c.bf16 %v1632_v58, %v1632_v58 }
 0x265   : > { %v967_v57 = vpop.xlane.xlu2 %966  ;;  %1468 = vmatmul.msk.bf16.vlgmr.msrb.gmra.mxu2 %vm717_vm2, %v822_v56 }
 0x266   : > { %v968_v59 = vsub.f32 %v961_v40, %v967_v57 }
 0x267   : > { %v900_v60 = vpop.permute.xlu1 %899 }
 0x268   : > { %v969_v61 = vmul.f32 1.442695, %v968_v59  ;;  %v976_v62 = vpop.permute.xlu0 %975  ;;  %v905_v63 = vsel %vm752_vm3, %v900_v60, 0 }
 0x269   : > { %v981_v0 = vsel %vm752_vm3, %v976_v62, 0  ;;  %914 = vmatpush.bf16.msrb.mxu1 %v905_v63 }
 0x26a   : > { %1633 = vpow2.f32 %v969_v61  ;;  %990 = vmatpush.bf16.msra.mxu2 %v981_v0  ;;  %896 = vadd.xlane.f32.xlu2 %v895_v1 }
 0x26c   : > { %1470 = vmatmul.msk.bf16.vlgmr.msrb.gmra.mxu1 %vm717_vm2, %v898_v2 }
 0x270   : > { %v1634_v4 = vpop.eup %1633 }
 0x271   : > { %v971_v5 = vsel %vm717_vm2, %v1634_v4, 0.0  ;;  %v974_v7 = vpack.c.bf16 %v1634_v4, %v1634_v4 }
 0x272   : > { %972 = vadd.xlane.f32.xlu0 %v971_v5  ;;  %744 = vadd.xlane.f32.xlu2 %v743_v6  ;;  %v1519_v5 = vld [vmem:[%s1974_s0 + $0x8] sm:$0xff]  ;;  %v1518_v6 = vld [vmem:[%s1974_s0] sm:$0xff] }
 0x273   : > { %1048 = vmatpush.bf16.msra.mxu0 %v1519_v5 }
 0x275   : > { %1472 = vmatmul.msk.bf16.vlgmr.msra.gmra.mxu2 %vm717_vm2, %v974_v7 }
 0x277   : > { %1049 = vmatpush.bf16.msra.mxu0 %v1518_v6 }
 0x2d5   : > { %v821_v8 = vpop.xlane.xlu2 %820 }
 0x2d6   : > { %1635 = vrcp.f32 %v821_v8  ;;  %v855_v16 = vand.u32 2147483648, %v821_v8  ;;  %vm849_vm5 = vweird.f32 %v821_v8  ;;  %v853_v18 = vand.u32 2147483647, %v821_v8 }
 0x2d8   : > { %v2059_v9 = vpop.f32.mrf.mxu2  ;;  %v856_v24 = vor.u32 1.1754944e-38, %v855_v16  ;;  %vm854_vm7 = vcmp.eq.f32.partialorder %v853_v18, 8.507059e+37 }
 0x2dc   : > { %v1636_v10 = vpop.eup %1635 }
 0x2dd   : > { %v845_v11 = vmul.f32 %v1636_v10, %v821_v8  ;;  %v897_v12 = vpop.xlane.xlu2 %896  ;;  %vm850_vm4 = vweird.f32 %v1636_v10 }
 0x2de   : > { %1637 = vrcp.f32 %v897_v12  ;;  %vm851_vm6 = vmor %vm849_vm5, %vm850_vm4  ;;  %v931_v28 = vand.u32 2147483648, %v897_v12  ;;  %v929_v32 = vand.u32 2147483647, %v897_v12  ;;  %vm925_vm9 = vweird.f32 %v897_v12 }
 0x2df   : > { %v846_v13 = vsub.f32 1.0, %v845_v11  ;;  %vm785_vm5 = vcmask 60416   ;;  %v1620_v11 = vld [vmem:[%s2221_s12] ss:$0 sm:$0xff]  ;;  %s2230_s12 = smov %s2229_s27 }
 0x2e0   : > { %v767_v14 = vpop.f32.mrf.mxu2  ;;  %v932_v36 = vor.u32 1.1754944e-38, %v931_v28  ;;  %vm930_vm11 = vcmp.eq.f32.partialorder %v929_v32, 8.507059e+37  ;;  %v1521_v28 = vld [vmem:[%s1991_s23 + $0x8] sm:$0xff] }
 0x2e1   : > { %v847_v15 = vmul.f32 %v1636_v10, %v846_v13  ;;  %1125 = vmatpush.bf16.msra.mxu1 %v1521_v28 }
 0x2e3   : > { %v848_v17 = vadd.f32 %v1636_v10, %v847_v15 }
 0x2e4   : > { %v1638_v19 = vpop.eup %1637 }
 0x2e5   : > { %v921_v20 = vmul.f32 %v1638_v19, %v897_v12  ;;  %v973_v21 = vpop.xlane.xlu0 %972  ;;  %v745_v22 = vpop.xlane.xlu2 %744  ;;  %v852_v23 = vsel %vm851_vm6, %v1636_v10, %v848_v17  ;;  %vm926_vm8 = vweird.f32 %v1638_v19  ;;  %vm864_vm6 = vcmask 126016  }
 0x2e6   : > { %1639 = vrcp.f32 %v973_v21  ;;  %v857_v27 = vsel %vm854_vm7, %v856_v24, %v852_v23  ;;  %vm927_vm10 = vmor %vm925_vm9, %vm926_vm8  ;;  %v780_v46 = vand.u32 2147483648, %v745_v22  ;;  %v778_v51 = vand.u32 2147483647, %v745_v22 }
 0x2e7   : > { %v922_v25 = vsub.f32 1.0, %v921_v20  ;;  %1641 = vrcp.f32 %v745_v22  ;;  %v1007_v52 = vand.u32 2147483648, %v973_v21  ;;  %vm1001_vm14 = vweird.f32 %v973_v21 }
 0x2e8   : > { %v840_v26 = vpop.f32.mrf.mxu2  ;;  %v1005_v54 = vand.u32 2147483647, %v973_v21  ;;  %vm774_vm15 = vweird.f32 %v745_v22  ;;  %v781_v56 = vor.u32 1.1754944e-38, %v780_v46  ;;  %vm779_vm3 = vcmp.eq.f32.partialorder %v778_v51, 8.507059e+37 }
 0x2e9   : > { %v858_v29 = vmul.f32 %v857_v27, %v840_v26  ;;  %v916_v30 = vpop.f32.mrf.mxu1  ;;  %v923_v31 = vmul.f32 %v1638_v19, %v922_v25  ;;  %v1008_v58 = vor.u32 1.1754944e-38, %v1007_v52  ;;  %vm940_vm7 = vcmask 191616  }
 0x2ea   : > { %vm1006_vm4 = vcmp.eq.f32.partialorder %v1005_v54, 8.507059e+37  ;;  %vm1016_vm8 = vcmask 257216   ;;  %v1793_v17 = vmov 32.0  }
 0x2eb   : > { %v859_v33 = vpack.c.bf16 %v858_v29, %v858_v29  ;;  %v924_v34 = vadd.f32 %v1638_v19, %v923_v31  ;;  %1643 = vrcp.f32 %v1793_v17  ;;  %v1520_v29 = vld [vmem:[%s1991_s23] sm:$0xff] }
 0x2ec   : > { %v1640_v35 = vpop.eup %1639  ;;  %1126 = vmatpush.bf16.msra.mxu1 %v1520_v29 }
 0x2ed   : > { %v1642_v37 = vpop.eup %1641  ;;  %v997_v38 = vmul.f32 %v1640_v35, %v973_v21  ;;  %v928_v39 = vsel %vm927_vm10, %v1638_v19, %v924_v34  ;;  %861 = vrot.lane.b32.xlu1 %v859_v33, %s1790_s14  ;;  %vm1002_vm12 = vweird.f32 %v1640_v35  ;;  %v1524_v33 = vld [vmem:[%s2001_s17 + $0x10] sm:$0xff] }
 0x2ee   : > { %v770_v40 = vmul.f32 %v1642_v37, %v745_v22  ;;  %v933_v41 = vsel %vm930_vm11, %v932_v36, %v928_v39  ;;  %vm775_vm13 = vweird.f32 %v1642_v37  ;;  %vm1003_vm0 = vmor %vm1001_vm14, %vm1002_vm12 }
 0x2ef   : > { %v998_v42 = vsub.f32 1.0, %v997_v38  ;;  %v934_v43 = vmul.f32 %v933_v41, %v916_v30  ;;  %vm776_vm2 = vmor %vm774_vm15, %vm775_vm13  ;;  %v1525_v30 = vld [vmem:[%s2001_s17 + $0x18] sm:$0xff]  ;;  %v1621_v41 = vld [vmem:[%s2222_s22] ss:$0 sm:$0xff]  ;;  %vm1170_vm13 = vcmask 523264  }
 0x2f0   : > { %v771_v44 = vsub.f32 1.0, %v770_v40  ;;  %v842_v45 = vpop.f32.mrf.mxu2  ;;  %1178 = vmatpush.bf16.msra.mxu3 %v1525_v30 }
 0x2f1   : > { %v935_v47 = vpack.c.bf16 %v934_v43, %v934_v43  ;;  %v918_v48 = vpop.f32.mrf.mxu1  ;;  %v999_v49 = vmul.f32 %v1640_v35, %v998_v42  ;;  %v1644_v18 = vpop.eup %1643  ;;  %v1622_v43 = vld [vmem:[%s2224_s18] ss:$0 sm:$0xff] }
 0x2f2   : > { %v772_v50 = vmul.f32 %v1642_v37, %v771_v44  ;;  %v1060_v19 = vmul.f32 32.0, %v1644_v18  ;;  %vm1064_vm9 = vweird.f32 %v1644_v18  ;;  %v1523_v48 = vld [vmem:[%s2001_s17 + $0x8] sm:$0xff] }
 0x2f3   : > { %937 = vrot.lane.b32.xlu2 %v935_v47, %s1791_s19  ;;  %v1000_v53 = vadd.f32 %v1640_v35, %v999_v49  ;;  %v1522_v49 = vld [vmem:[%s2001_s17] sm:$0xff] }
 0x2f4   : > { %v773_v55 = vadd.f32 %v1642_v37, %v772_v50  ;;  %v1061_v20 = vsub.f32 1.0, %v1060_v19  ;;  %1179 = vmatpush.bf16.msra.mxu3 %v1524_v33  ;;  %v1623_v50 = vld [vmem:[%s647_s1] ss:$0 sm:$0xff]  ;;  %s2226_s1 = sld [smem:[#allocation12_spill]] }
 0x2f5   : > { %v1004_v57 = vsel %vm1003_vm0, %v1640_v35, %v1000_v53 }
 0x2f6   : > { %v777_v59 = vsel %vm776_vm2, %v1642_v37, %v773_v55  ;;  %v1009_v62 = vsel %vm1006_vm4, %v1008_v58, %v1004_v57  ;;  %v1062_v21 = vmul.f32 %v1644_v18, %v1061_v20 }
 0x2f7   : > { %v782_v60 = vsel %vm779_vm3, %v781_v56, %v777_v59  ;;  %v1624_v56 = vld [vmem:[%s655_s15] ss:$0 sm:$0xff]  ;;  %s2227_s15 = sld [smem:[#allocation21_spill]] }
 0x2f8   : > { %v992_v61 = vpop.f32.mrf.mxu2  ;;  %v783_v63 = vmul.f32 %v782_v60, %v2059_v9  ;;  %v1063_v22 = vadd.f32 %v1644_v18, %v1062_v21  ;;  %1180 = vmatpush.bf16.msra.mxu3 %v1523_v48 }
 0x2f9   : > { %v1010_v0 = vmul.f32 %v1009_v62, %v992_v61 }
 0x2fa   : > { %v784_v1 = vpack.c.bf16 %v783_v63, %v783_v63  ;;  %v1065_v23 = vsel %vm1064_vm9, %v1644_v18, %v1063_v22  ;;  %s1509_s17 = sshll.u32 %s2226_s1, 3 }
 0x2fb   : > { %v1011_v2 = vpack.c.bf16 %v1010_v0, %v1010_v0  ;;  %s1232_s29 = scalar_lea.hbm %s2229_s27, %s1509_s17 }
 0x2fc   : > { %786 = vst.msk [vmem:[#allocation2] sm:$0xf] %vm785_vm5, %v784_v1  ;;  %1181 = vmatpush.bf16.msra.mxu3 %v1522_v49  ;;  %s1236_s28 = sshll.u32 %s1232_s29, 4  ;;  %s1237_s28 = int_to_ptr.hbm [resolvable:$true] %s1236_s28 }
 0x2fd   : > { %1013 = vrot.lane.b32.xlu1 %v1011_v2, %s1792_s26  ;;  %s1693_s18 = sshra.s32 %s1237_s28, 4  ;;  %s1694_s18 = int_to_ptr.hbm [resolvable:$true] %s1693_s18 }
 0x2fe   : > { %s1695_s20 = scalar_lea.hbm %s1694_s18, 8  ;;  %p1700_p9 = scmp.lt.s32.totalorder %s1694_s18, %s2230_s12 }
 0x2ff   : > { %p1696_p6 = scmp.ne.s32.totalorder %s1694_s18, %s1695_s20 }
 0x300   : > { %v994_v4 = vpop.f32.mrf.mxu2 }
 0x301   : > { %p1697_p7 = pnand %p1696_p6, %p1927_p10 }
 0x303   : > { %p1698_p8 = pneg %p1697_p7 }
 0x34d   : > { %v938_v8 = vpop.permute.xlu2 %937 }
 0x35f   : > { %v862_v7 = vpop.permute.xlu1 %861 }
 0x360   : > { %865 = vst.msk [vmem:[#allocation2] sm:$0xf] %vm864_vm6, %v862_v7 }
 0x361   : > { %941 = vst.msk [vmem:[#allocation2] sm:$0xf] %vm940_vm7, %v938_v8 }
 0x36f   : > { %v1014_v9 = vpop.permute.xlu1 %1013 }
 0x370   : > { %1017 = vst.msk [vmem:[#allocation2] sm:$0xf] %vm1016_vm8, %v1014_v9 }
 0x377   : > { %v1018_v10 = vld [vmem:[#allocation2] sm:$0xf] }
 0x378   : > { %1481 = vmatmul.msk.bf16.vlgmr.msra.gmra.mxu0 %vm692_vm1, %v1018_v10 }
 0x3f5   : > { %v1051_v12 = vpop.f32.mrf.mxu0 }
 0x3f6   : > { %v1052_v13 = vadd.f32 %v1620_v11, %v1051_v12 }
 0x3f8   : > { %v1055_v14 = vadd.f32 %v1052_v13, %v2020_v3  ;;  %v1625_v13 = vld [vmem:[%s658_s2] ss:$0 sm:$0xff]  ;;  %s1222_s2 = scalar_lea.sflag [#allocation5], %s2227_s15 }
 0x3fa   : > { %v1056_v15 = vsel %vm692_vm1, %v1055_v14, 0.0 }
 0x3fb   : > { %1057 = vadd.xlane.f32.xlu1 %v1056_v15 }
 0x3fd   : > { %v1053_v16 = vpop.f32.mrf.mxu0 }
 0x3fe   : > { %v1626_v16 = vld [vmem:[%s661_s6] ss:$0 sm:$0xff]  ;;  %s1699_s6 = scalar_lea.hbm %s2230_s12, 16 }
 0x3ff   : > { %p1701_p12 = scmp.lt.s32.totalorder %s1699_s6, %s1695_s20 }
 0x401   : > { %p1702_p13 = por %p1701_p12, %p1700_p9 }
 0x403   : > { %p1703_p0 = pnand %p1702_p13, %p1698_p8 }
 0x46e   : > { %v1058_v24 = vpop.xlane.xlu1 %1057 }
 0x46f   : > { %v1066_v25 = vmul.f32 %v1065_v23, %v1058_v24 }
 0x471   : > { %v1067_v3 = vsub.f32 %v1055_v14, %v1066_v25 }
 0x473   : > { %v1068_v26 = vmul.f32 %v1067_v3, %v1067_v3 }
 0x475   : > { %v1069_v27 = vsel %vm692_vm1, %v1068_v26, 0.0 }
 0x476   : > { %1070 = vadd.xlane.f32.xlu2 %v1069_v27 }
 0x4e9   : > { %v1071_v31 = vpop.xlane.xlu2 %1070 }
 0x4ea   : > { %v1072_v32 = vmul.f32 %v1071_v31, %v1065_v23 }
 0x4ec   : > { %v1073_v34 = vadd.f32 1e-05, %v1072_v32 }
 0x4ee   : > { %1645 = vrsqrt.f32 %v1073_v34  ;;  %vm1080_vm11 = vweird.f32 %v1073_v34 }
 0x4f4   : > { %v1646_v35 = vpop.eup %1645 }
 0x4f5   : > { %v1075_v36 = vmul.f32 %v1646_v35, %v1073_v34  ;;  %vm1081_vm10 = vweird.f32 %v1646_v35 }
 0x4f6   : > { %vm1082_vm12 = vmor %vm1080_vm11, %vm1081_vm10 }
 0x4f7   : > { %v1076_v37 = vmul.f32 %v1646_v35, %v1075_v36 }
 0x4f9   : > { %v1077_v38 = vmul.f32 0.5, %v1076_v37 }
 0x4fb   : > { %v1078_v39 = vsub.f32 1.5, %v1077_v38 }
 0x4fd   : > { %v1079_v40 = vmul.f32 %v1646_v35, %v1078_v39 }
 0x4ff   : > { %v1083_v42 = vsel %vm1082_vm12, %v1646_v35, %v1079_v40 }
 0x500   : > { %v1084_v44 = vmul.f32 %v1083_v42, %v1067_v3 }
 0x502   : > { %v1089_v45 = vmul.f32 %v1621_v41, %v1084_v44 }
 0x504   : > { %v1094_v46 = vadd.f32 %v1622_v43, %v1089_v45 }
 0x506   : > { %v1095_v47 = vpack.c.bf16 %v1094_v46, %v1094_v46 }
 0x508   : > { %1490 = vmatmul.msk.bf16.vlgmr.msra.gmra.mxu1 %vm692_vm1, %v1095_v47 }
 0x585   : > { %v1128_v51 = vpop.f32.mrf.mxu1 }
 0x586   : > { %v1129_v52 = vadd.f32 %v1623_v50, %v1128_v51 }
 0x588   : > { %v1132_v53 = vmax.f32 %v1129_v52, 0.0 }
 0x58a   : > { %v1133_v54 = vpack.c.bf16 %v1132_v53, %v1132_v53 }
 0x58c   : > { %1507 = vmatmul.msk.bf16.vlgmr.msra.gmra.mxu3 %vm1170_vm13, %v1133_v54 }
 0x58d   : > { %v1130_v55 = vpop.f32.mrf.mxu1 }
 0x60f   : > { %v1183_v57 = vpop.f32.mrf.mxu3 }
 0x610   : > { %v1184_v58 = vadd.f32 %v1624_v56, %v1183_v57 }
 0x612   : > { %v1187_v59 = vadd.f32 %v1184_v58, %v1094_v46 }
 0x614   : > { %v1188_v60 = vsel %vm692_vm1, %v1187_v59, 0.0 }
 0x615   : > { %1189 = vadd.xlane.f32.xlu0 %v1188_v60 }
 0x617   : > { %v1185_v61 = vpop.f32.mrf.mxu3 }
 0x688   : > { %v1190_v62 = vpop.xlane.xlu0 %1189 }
 0x689   : > { %v1191_v63 = vmul.f32 %v1190_v62, %v1065_v23 }
 0x68b   : > { %v1192_v0 = vsub.f32 %v1187_v59, %v1191_v63 }
 0x68d   : > { %v1193_v1 = vmul.f32 %v1192_v0, %v1192_v0 }
 0x68f   : > { %v1194_v2 = vsel %vm692_vm1, %v1193_v1, 0.0 }
 0x690   : > { %1195 = vadd.xlane.f32.xlu0 %v1194_v2 }
 0x703   : > { %v1196_v4 = vpop.xlane.xlu0 %1195 }
 0x704   : > { %v1197_v5 = vmul.f32 %v1196_v4, %v1065_v23 }
 0x706   : > { %v1198_v6 = vadd.f32 1e-05, %v1197_v5 }
 0x708   : > { %1647 = vrsqrt.f32 %v1198_v6  ;;  %vm1205_vm15 = vweird.f32 %v1198_v6 }
 0x70e   : > { %v1648_v7 = vpop.eup %1647 }
 0x70f   : > { %v1200_v8 = vmul.f32 %v1648_v7, %v1198_v6  ;;  %vm1206_vm14 = vweird.f32 %v1648_v7 }
 0x710   : > { %vm1207_vm0 = vmor %vm1205_vm15, %vm1206_vm14 }
 0x711   : > { %v1201_v9 = vmul.f32 %v1648_v7, %v1200_v8 }
 0x713   : > { %v1202_v10 = vmul.f32 0.5, %v1201_v9 }
 0x715   : > { %v1203_v11 = vsub.f32 1.5, %v1202_v10 }
 0x717   : > { %v1204_v12 = vmul.f32 %v1648_v7, %v1203_v11 }
 0x719   : > { %v1208_v14 = vsel %vm1207_vm0, %v1648_v7, %v1204_v12 }
 0x71a   : > { %v1209_v15 = vmul.f32 %v1208_v14, %v1192_v0 }
 0x71c   : > { %v1214_v17 = vmul.f32 %v1625_v13, %v1209_v15 }
 0x71e   : > { %v1219_v18 = vadd.f32 %v1626_v16, %v1214_v17 }
 0x720   : > { %1220 = vst.msk [vmem:[%s2015_s24] sm:$0xff] %vm692_vm1, %v1219_v18 }
 0x721   : > { %1706 = shalt.err (!%p1703_p0)
}
 0x722   : > { %1528 = dma.vmem_to_hbm [thread:$0]  (%p1927_p10), %s1235_s7, 128, %s1237_s28, %s1222_s2  }
 0x723 PF: > { %s2233_s24 = sld [smem:[#allocation15_spill]] }
 0x724   : > { %s2234_s16 = sld [smem:[#allocation9_spill]] }
 0x729   : > { %p1539_p1 = scmp.ge.s32.totalorder %s2233_s24, 2 }
 0x72a   : > { %s1248_s17 = sand.u32 1, %s2234_s16  }
 0x72b   : > { %p1535_p2 = pnand %p1539_p1, %p1933_p11  ;;  %s1249_s15 = scalar_lea.sflag [#allocation5], %s1248_s17 }
 0x72d   : > { %p1536_p4 = pneg %p1535_p2 }
 0x72f   : > { %1744 = dma.done.wait (%p1536_p4), %s1249_s15, 128  }
 0x730   : > { %1746 = vsyncadd (%p1536_p4), %s1249_s15, 4294967168  ;;  %s29_s15 = sadd.s32 1, %s2233_s24   ;;  %s2236_s25 = sld [smem:[#allocation10_spill]] }
 0x731   : > { %p26_p3 = scmp.ge.s32.totalorder %s29_s15, 6   ;;  %s2237_s26 = sld [smem:[#allocation11_spill]] }
 0x732   : > { %s2238_s27 = sld [smem:[#allocation20_spill]] }
 0x733   : > { %s2239_s28 = sld [smem:[#allocation13_spill]]  ;;  %28 = sbr.rel (!%p26_p3) target bundleno = 18 (0x12), region = 157 }
 0x734   : > { %s2240_s29 = sld [smem:[#allocation14_spill]] }
 0x735   : > { %s2241_s30 = sld [smem:[#allocation16_spill]] }
 0x736   : > { %s2242_s14 = sld [smem:[#allocation17_spill]] }
 0x738   :  { %1255 = vsyncpa [#allocation4], 1 }
 0x739   :  { %1257 = vsyncpa [#allocation4 + $0x1], 1 }
 0x73a   :  { %1258 = vsyncpa [#allocation5], 1 }
 0x73b   :  { %1260 = vsyncpa [#allocation5 + $0x1], 1 }

</bundles_post_ra>
